<compile_context>
chip_gen: v5e
topology: v5e:2x2
jax: 0.10.0
libtpu: 0.0.40
codegen_flags: <defaults>
</compile_context>

<pallas_src>
import numpy as np
import jax
import jax.numpy as jnp
from jax import lax
from jax.experimental import pallas as pl
from jax.experimental.pallas import tpu as pltpu


def _round_up(x, m):
    return ((x + m - 1) // m) * m


def _expand_conv3d_weight_np(w, in_spatial):
    """Toeplitz-expand a dense VALID / stride-1 3-D conv weight (host-side numpy).

    w: (Cout, Cin, k, k, k), in_spatial = (U, V, T).
    Returns (wexp, out_spatial) with wexp of shape (Cout*S_out, Cin*S_in) so that
      conv(x)[n, co, s_out] = sum_{ci, s_in} wexp[co*S_out+s_out, ci*S_in+s_in]
                                             * x[n, ci, s_in]
    with s_out / s_in row-major over the output / input spatial grids.
    """
    Cout, Cin, k = w.shape[0], w.shape[1], w.shape[2]
    U, V, T = in_spatial
    Z, Y, X = U - k + 1, V - k + 1, T - k + 1
    So, Si = Z * Y * X, U * V * T
    wexp = np.zeros((Cout, So, Cin, Si), np.float32)
    for z in range(Z):
        for y in range(Y):
            for xx in range(X):
                o = (z * Y + y) * X + xx
                for kz in range(k):
                    for ky in range(k):
                        for kx in range(k):
                            i = ((z + kz) * V + (y + ky)) * T + (xx + kx)
                            wexp[:, o, :, i] = w[:, :, kz, ky, kx]
    return wexp.reshape(Cout * So, Cin * Si), (Z, Y, X)


def _build_kernel(nblk, Cmid, Ch, N, S, cnts):
    """Fused kernel: nblk x [conv+BN(train)+ReLU] -> 1x1x1 conv -> IN -> LeakyReLU."""

    def kernel(*refs):
        o_ref = refs[-1]
        cur = refs[0][...]                                           # (K0p, N) bf16
        pos = 1
        for j in range(nblk):
            w_ref, bias_ref, g_ref, be_ref, sc_ref, scT_ref = refs[pos:pos + 6]
            pos += 6
            # Conv block j: ONE stacked GEMM (all channels / spatial rows at once).
            acc = jnp.dot(w_ref[...], cur,
                          preferred_element_type=jnp.float32) + bias_ref[...]
            # BatchNorm3d (training) stats over (rows-of-channel x lanes):
            # one selector matmul on [acc | acc*acc], then one lane reduce.
            acc2 = jnp.concatenate([acc, acc * acc], axis=1)          # (Mp, 2N)
            s12 = jnp.dot(sc_ref[...], acc2,
                          preferred_element_type=jnp.float32)         # (Cmid, 2N)
            inv_cnt = 1.0 / float(cnts[j])
            mu = jnp.sum(s12[:, :N], axis=1, keepdims=True) * inv_cnt  # (Cmid, 1)
            ex2 = jnp.sum(s12[:, N:], axis=1, keepdims=True) * inv_cnt
            var = jnp.maximum(ex2 - mu * mu, 0.0)                      # clamp >= 0
            scale = g_ref[...] * lax.rsqrt(var + 1e-5)                 # (Cmid, 1)
            shift = be_ref[...] - mu * scale
            # Broadcast scale/shift back to the stacked rows with one matmul.
            aff = jnp.dot(
                scT_ref[...],
                jnp.concatenate([jnp.broadcast_to(scale, (Cmid, N)),
                                 jnp.broadcast_to(shift, (Cmid, N))], axis=1),
                preferred_element_type=jnp.float32)                    # (Mp, 2N)
            act = jnp.maximum(acc * aff[:, :N] + aff[:, N:], 0.0)      # BN + ReLU
            cur = act.astype(jnp.bfloat16) if j + 1 < nblk else act

        # 1x1x1 conv head: one small f32 GEMM over the stacked (Cmid->8, N) slab.
        wh_ref, bh_ref, seln_ref, selnt_ref = refs[pos:pos + 4]
        yh = jnp.dot(wh_ref[...], cur,
                     preferred_element_type=jnp.float32) + bh_ref[...]  # (Ch, N)

        # InstanceNorm3d (affine=False): per-sample stats over the S lanes of each
        # sample; ssum/ssq and the broadcast-back are each one dot on a stack.
        yh2 = jnp.concatenate([yh, yh * yh], axis=0)                   # (2Ch, N)
        ss = jnp.dot(yh2, seln_ref[...],
                     preferred_element_type=jnp.float32)               # (2Ch, b)
        inv_s = 1.0 / float(S)
        mu = ss[:Ch] * inv_s
        var = jnp.maximum(ss[Ch:] * inv_s - mu * mu, 0.0)
        inv = lax.rsqrt(var + 1e-5)
        mi_f = jnp.dot(jnp.concatenate([mu, inv], axis=0), selnt_ref[...],
                       preferred_element_type=jnp.float32)             # (2Ch, N)
        yn = (yh - mi_f[:Ch]) * mi_f[Ch:]
        o_ref[...] = jnp.where(yn >= 0.0, yn, 0.1 * yn)                # LeakyReLU

    return kernel


def make_self_similarity_forward(params, x_shape):
    """One-time host-side weight prep + a jitted per-call forward."""
    b, c, l, w_, h, u, v, t = (int(d) for d in x_shape)
    N = b * l * w_ * h
    S = l * w_ * h
    Cmid = int(params["conv_in"][0]["w"].shape[0])
    Ch = int(params["head_w"].shape[0])
    nblk = len(params["conv_in"])
    assert c == Cmid, "x channel dim must equal mid_ch"

    K0 = c * u * v * t
    K0p = _round_up(K0, 128)

    # ---- one-time constant construction (numpy, then uploaded once) ----
    spatial = (u, v, t)
    consts, cnts, mps = [], [], []
    Kprev, Kprev_p = K0, K0p
    for j, blk in enumerate(params["conv_in"]):
        w_np = np.asarray(blk["w"], np.float32)
        wexp, spatial = _expand_conv3d_weight_np(w_np, spatial)   # (Co*So, Ci*Si)
        Co = w_np.shape[0]
        M = wexp.shape[0]
        So = M // Co
        assert wexp.shape[1] == Kprev
        # Block 0 (dominant GEMM): pad rows to 128 to fill the MXU; others to 8.
        Mp = _round_up(M, 128) if j == 0 else _round_up(M, 8)
        Wp = np.zeros((Mp, Kprev_p), np.float32)
        Wp[:M, :Kprev] = wexp
        bias_rows = np.zeros((Mp, 1), np.float32)
        sel_c = np.zeros((Cmid, Mp), np.float32)
        b_np = np.asarray(blk["b"], np.float32)
        for co in range(Co):
            bias_rows[co * So:(co + 1) * So, 0] = b_np[co]
            sel_c[co, co * So:(co + 1) * So] = 1.0
        consts += [
            jnp.asarray(Wp, jnp.bfloat16),
            jnp.asarray(bias_rows),
            jnp.asarray(np.asarray(blk["gamma"], np.float32).reshape(Cmid, 1)),
            jnp.asarray(np.asarray(blk["beta"], np.float32).reshape(Cmid, 1)),
            jnp.asarray(sel_c),
            jnp.asarray(np.ascontiguousarray(sel_c.T)),
        ]
        cnts.append(So * N)
        mps.append(Mp)
        Kprev, Kprev_p = M, Mp

    assert int(np.prod(spatial)) == 1, "conv_in must collapse (u,v,t) to (1,1,1)"
    Mlast_p = Kprev_p
    head_wp = np.zeros((Ch, Mlast_p), np.float32)
    head_wp[:, :Cmid] = np.asarray(params["head_w"], np.float32)
    bh_col = np.asarray(params["head_b"], np.float32).reshape(Ch, 1)
    sel = (np.arange(N)[:, None] // S == np.arange(b)[None, :]).astype(np.float32)
    consts += [jnp.asarray(head_wp), jnp.asarray(bh_col),
               jnp.asarray(sel), jnp.asarray(np.ascontiguousarray(sel.T))]

    # ---- advisory cost model ----
    flops, Kp = 0, K0p
    for j in range(nblk):
        flops += 2 * mps[j] * Kp * N            # stacked conv GEMM
        flops += 2 * Cmid * mps[j] * 2 * N      # BN stats selector matmul
        flops += 2 * mps[j] * Cmid * 2 * N      # scale/shift broadcast-back matmul
        flops += 8 * mps[j] * N                 # bias / affine / relu / squares
        Kp = mps[j]
    flops += 2 * Ch * Mlast_p * N               # head GEMM
    flops += 2 * (2 * Ch) * N * b * 2 + 8 * Ch * N
    bytes_accessed = 2 * K0p * N + 4 * Ch * N
    bytes_accessed += sum(int(np.prod(a.shape)) * a.dtype.itemsize for a in consts)
    cost = pl.CostEstimate(flops=int(flops),
                           transcendentals=int(Cmid * nblk + Ch * b),
                           bytes_accessed=int(bytes_accessed))

    vmem = pl.BlockSpec(memory_space=pltpu.MemorySpace.VMEM)
    call = pl.pallas_call(
        _build_kernel(nblk, Cmid, Ch, N, S, cnts),
        out_shape=jax.ShapeDtypeStruct((Ch, N), jnp.float32),
        in_specs=[vmem] * (1 + len(consts)),
        out_specs=vmem,
        cost_estimate=cost,
        # Raised scoped-VMEM headroom (harmless here, helps moderately larger N
        # on v5e/v6e before an N-tiled grid becomes necessary; see TODO above).
        compiler_params=pltpu.CompilerParams(vmem_limit_bytes=48 * 1024 * 1024),
    )

    @jax.jit
    def forward(x):
        # PyTorch's permute+view glue; pixels (N = b*l*w*h) onto the lane axis.
        xp = jnp.transpose(x, (0, 5, 6, 7, 1, 2, 3, 4)).reshape(N, K0)
        a_mat = jnp.pad(xp.T, ((0, K0p - K0), (0, 0))).astype(jnp.bfloat16)
        out = call(a_mat, *consts)
        # (Ch, N) with N = (b, l, w, h) row-major  ->  (b, Ch, l, w, h)
        return out.reshape(Ch, b, l, w_, h).transpose(1, 0, 2, 3, 4)

    return forward


# ---------------------------------------------------------------------------
# Pure-JAX reference.  The conv GEMMs use the same bf16-operand / f32-accumulate
# precision as the Pallas kernel (native MXU path); all norms are exact f32.
# ---------------------------------------------------------------------------
def reference_forward(x, params):
    b, c, l, w_, h, u, v, t = x.shape
    xp = jnp.transpose(x, (0, 5, 6, 7, 1, 2, 3, 4)).reshape(b * l * w_ * h, c, u, v, t)
    for blk in params["conv_in"]:
        y = lax.conv_general_dilated(
            xp.astype(jnp.bfloat16), blk["w"].astype(jnp.bfloat16),
            (1, 1, 1), "VALID",
            dimension_numbers=("NCDHW", "OIDHW", "NCDHW"),
            preferred_element_type=jnp.float32)
        y = y + blk["b"][None, :, None, None, None]
        mean = jnp.mean(y, axis=(0, 2, 3, 4), keepdims=True)
        var = jnp.mean((y - mean) ** 2, axis=(0, 2, 3, 4), keepdims=True)
        y = ((y - mean) * lax.rsqrt(var + 1e-5)
             * blk["gamma"][None, :, None, None, None]
             + blk["beta"][None, :, None, None, None])
        xp = jnp.maximum(y, 0.0)
    cc = xp.shape[1]
    xm = xp.reshape(b, l, w_, h, cc).transpose(0, 4, 1, 2, 3)
    y = jnp.einsum("oc,bclwh->bolwh", params["head_w"], xm,
                   precision=lax.Precision.HIGHEST)
    y = y + params["head_b"][None, :, None, None, None]
    mean = jnp.mean(y, axis=(2, 3, 4), keepdims=True)
    var = jnp.mean((y - mean) ** 2, axis=(2, 3, 4), keepdims=True)
    yh = (y - mean) * lax.rsqrt(var + 1e-5)
    return jnp.where(yh >= 0, yh, 0.1 * yh)


# ---------------------------------------------------------------------------
# Deterministic parameter construction (matches the module __init__ shapes)
# ---------------------------------------------------------------------------
def make_params(in_ch, mid_ch, unfold_size, ksize, key):
    keys = jax.random.split(key, 2 * (unfold_size // 2) + 2)
    conv_in = []
    for i in range(unfold_size // 2):
        kw, kb = keys[2 * i], keys[2 * i + 1]
        conv_in.append(dict(
            w=0.1 * jax.random.normal(kw, (mid_ch, mid_ch, ksize, ksize, ksize), jnp.float32),
            b=0.1 * jax.random.normal(kb, (mid_ch,), jnp.float32),
            gamma=jnp.ones((mid_ch,), jnp.float32),   # BatchNorm default init
            beta=jnp.zeros((mid_ch,), jnp.float32),
        ))
    head_w = 0.1 * jax.random.normal(keys[-2], (in_ch, mid_ch), jnp.float32)
    head_b = 0.1 * jax.random.normal(keys[-1], (in_ch,), jnp.float32)
    return dict(conv_in=conv_in, head_w=head_w, head_b=head_b)


if __name__ == "__main__":
    in_ch, mid_ch, unfold_size, ksize = 8, 4, 5, 3
    b, l, w_, h = 2, 4, 4, 4
    u = v = t = unfold_size

    key = jax.random.PRNGKey(0)
    kx, kp = jax.random.split(key)
    x = jax.random.normal(kx, (b, mid_ch, l, w_, h, u, v, t), jnp.float32)
    params = make_params(in_ch, mid_ch, unfold_size, ksize, kp)

    fwd = make_self_similarity_forward(params, x.shape)   # one-time prep + jit
    out = jax.block_until_ready(fwd(x))
    assert out.shape == (b, in_ch, l, w_, h), out.shape

    ref = jax.block_until_ready(reference_forward(x, params))
    np.testing.assert_allclose(np.asarray(out), np.asarray(ref), rtol=2e-2, atol=2e-2)

    print("KERNEL_OK")
</pallas_src>

<mosaic_0001>
module attributes {stable_mosaic.version = 11 : i64} {
  func.func @kernel(%arg0: memref<512x128xbf16, #tpu.memory_space<vmem>>, %arg1: memref<128x512xbf16, #tpu.memory_space<vmem>>, %arg2: memref<128x1xf32, #tpu.memory_space<vmem>>, %arg3: memref<4x1xf32, #tpu.memory_space<vmem>>, %arg4: memref<4x1xf32, #tpu.memory_space<vmem>>, %arg5: memref<4x128xf32, #tpu.memory_space<vmem>>, %arg6: memref<128x4xf32, #tpu.memory_space<vmem>>, %arg7: memref<8x128xbf16, #tpu.memory_space<vmem>>, %arg8: memref<8x1xf32, #tpu.memory_space<vmem>>, %arg9: memref<4x1xf32, #tpu.memory_space<vmem>>, %arg10: memref<4x1xf32, #tpu.memory_space<vmem>>, %arg11: memref<4x8xf32, #tpu.memory_space<vmem>>, %arg12: memref<8x4xf32, #tpu.memory_space<vmem>>, %arg13: memref<8x8xf32, #tpu.memory_space<vmem>>, %arg14: memref<8x1xf32, #tpu.memory_space<vmem>>, %arg15: memref<128x2xf32, #tpu.memory_space<vmem>>, %arg16: memref<2x128xf32, #tpu.memory_space<vmem>>, %arg17: memref<8x128xf32, #tpu.memory_space<vmem>>) attributes {dimension_semantics = [], scalar_prefetch = 0 : i64, scratch_operands = 0 : i64, tpu.core_type = #tpu.core_type<tc>} {
    %c0 = arith.constant 0 : index
    %c0_0 = arith.constant 0 : index
    %0 = vector.load %arg0[%c0, %c0_0] : memref<512x128xbf16, #tpu.memory_space<vmem>>, vector<512x128xbf16>
    %c0_1 = arith.constant 0 : index
    %c0_2 = arith.constant 0 : index
    %1 = vector.load %arg1[%c0_1, %c0_2] : memref<128x512xbf16, #tpu.memory_space<vmem>>, vector<128x512xbf16>
    %cst = arith.constant dense<0.000000e+00> : vector<128x128xf32>
    %2 = tpu.matmul %1, %0, %cst {dimension_numbers = #tpu.dot_dimension_numbers<[1], [0], [0], [1], [0, 0, 1, 1], [], []>} : vector<128x512xbf16>, vector<512x128xbf16>, vector<128x128xf32> -> vector<128x128xf32>
    %c0_3 = arith.constant 0 : index
    %c0_4 = arith.constant 0 : index
    %3 = vector.load %arg2[%c0_3, %c0_4] : memref<128x1xf32, #tpu.memory_space<vmem>>, vector<128x1xf32>
    %4 = vector.broadcast %3 : vector<128x1xf32> to vector<128x128xf32>
    %5 = arith.addf %2, %4 : vector<128x128xf32>
    %6 = arith.mulf %5, %5 : vector<128x128xf32>
    %7 = tpu.concatenate %5, %6 in 1 : vector<128x128xf32>, vector<128x128xf32> -> vector<128x256xf32>
    %c0_5 = arith.constant 0 : index
    %c0_6 = arith.constant 0 : index
    %8 = vector.load %arg5[%c0_5, %c0_6] : memref<4x128xf32, #tpu.memory_space<vmem>>, vector<4x128xf32>
    %cst_7 = arith.constant dense<0.000000e+00> : vector<4x256xf32>
    %9 = tpu.matmul %8, %7, %cst_7 {dimension_numbers = #tpu.dot_dimension_numbers<[1], [0], [0], [1], [0, 0, 1, 1], [], []>} : vector<4x128xf32>, vector<128x256xf32>, vector<4x256xf32> -> vector<4x256xf32>
    %10 = vector.extract_strided_slice %9 {offsets = [0, 0], sizes = [4, 128], strides = [1, 1]} : vector<4x256xf32> to vector<4x128xf32>
    %cst_8 = arith.constant dense<0.000000e+00> : vector<4xf32>
    %11 = vector.multi_reduction <add>, %10, %cst_8 [1] : vector<4x128xf32> to vector<4xf32>
    %12 = vector.shape_cast %11 : vector<4xf32> to vector<4x1xf32>
    %cst_9 = arith.constant 2.89351854E-4 : f32
    %13 = vector.broadcast %cst_9 : f32 to vector<4x1xf32>
    %14 = arith.mulf %12, %13 : vector<4x1xf32>
    %15 = vector.extract_strided_slice %9 {offsets = [0, 128], sizes = [4, 128], strides = [1, 1]} : vector<4x256xf32> to vector<4x128xf32>
    %cst_10 = arith.constant dense<0.000000e+00> : vector<4xf32>
    %16 = vector.multi_reduction <add>, %15, %cst_10 [1] : vector<4x128xf32> to vector<4xf32>
    %17 = vector.shape_cast %16 : vector<4xf32> to vector<4x1xf32>
    %cst_11 = arith.constant 2.89351854E-4 : f32
    %18 = vector.broadcast %cst_11 : f32 to vector<4x1xf32>
    %19 = arith.mulf %17, %18 : vector<4x1xf32>
    %20 = arith.mulf %14, %14 : vector<4x1xf32>
    %21 = arith.subf %19, %20 : vector<4x1xf32>
    %cst_12 = arith.constant 0.000000e+00 : f32
    %22 = vector.broadcast %cst_12 : f32 to vector<4x1xf32>
    %23 = arith.maximumf %21, %22 : vector<4x1xf32>
    %c0_13 = arith.constant 0 : index
    %c0_14 = arith.constant 0 : index
    %24 = vector.load %arg3[%c0_13, %c0_14] : memref<4x1xf32, #tpu.memory_space<vmem>>, vector<4x1xf32>
    %cst_15 = arith.constant 9.99999974E-6 : f32
    %25 = vector.broadcast %cst_15 : f32 to vector<4x1xf32>
    %26 = arith.addf %23, %25 : vector<4x1xf32>
    %27 = math.rsqrt %26 : vector<4x1xf32>
    %28 = arith.mulf %24, %27 : vector<4x1xf32>
    %c0_16 = arith.constant 0 : index
    %c0_17 = arith.constant 0 : index
    %29 = vector.load %arg4[%c0_16, %c0_17] : memref<4x1xf32, #tpu.memory_space<vmem>>, vector<4x1xf32>
    %30 = arith.mulf %14, %28 : vector<4x1xf32>
    %31 = arith.subf %29, %30 : vector<4x1xf32>
    %c0_18 = arith.constant 0 : index
    %c0_19 = arith.constant 0 : index
    %32 = vector.load %arg6[%c0_18, %c0_19] : memref<128x4xf32, #tpu.memory_space<vmem>>, vector<128x4xf32>
    %33 = vector.shape_cast %28 : vector<4x1xf32> to vector<4x1xf32>
    %34 = vector.broadcast %33 : vector<4x1xf32> to vector<4x128xf32>
    %35 = vector.shape_cast %31 : vector<4x1xf32> to vector<4x1xf32>
    %36 = vector.broadcast %35 : vector<4x1xf32> to vector<4x128xf32>
    %37 = tpu.concatenate %34, %36 in 1 : vector<4x128xf32>, vector<4x128xf32> -> vector<4x256xf32>
    %cst_20 = arith.constant dense<0.000000e+00> : vector<128x256xf32>
    %38 = tpu.matmul %32, %37, %cst_20 {dimension_numbers = #tpu.dot_dimension_numbers<[1], [0], [0], [1], [0, 0, 1, 1], [], []>} : vector<128x4xf32>, vector<4x256xf32>, vector<128x256xf32> -> vector<128x256xf32>
    %39 = vector.extract_strided_slice %38 {offsets = [0, 0], sizes = [128, 128], strides = [1, 1]} : vector<128x256xf32> to vector<128x128xf32>
    %40 = arith.mulf %5, %39 : vector<128x128xf32>
    %41 = vector.extract_strided_slice %38 {offsets = [0, 128], sizes = [128, 128], strides = [1, 1]} : vector<128x256xf32> to vector<128x128xf32>
    %42 = arith.addf %40, %41 : vector<128x128xf32>
    %cst_21 = arith.constant 0.000000e+00 : f32
    %43 = vector.broadcast %cst_21 : f32 to vector<128x128xf32>
    %44 = arith.maximumf %42, %43 : vector<128x128xf32>
    %45 = arith.truncf %44 : vector<128x128xf32> to vector<128x128xbf16>
    %c0_22 = arith.constant 0 : index
    %c0_23 = arith.constant 0 : index
    %46 = vector.load %arg7[%c0_22, %c0_23] : memref<8x128xbf16, #tpu.memory_space<vmem>>, vector<8x128xbf16>
    %cst_24 = arith.constant dense<0.000000e+00> : vector<8x128xf32>
    %47 = tpu.matmul %46, %45, %cst_24 {dimension_numbers = #tpu.dot_dimension_numbers<[1], [0], [0], [1], [0, 0, 1, 1], [], []>} : vector<8x128xbf16>, vector<128x128xbf16>, vector<8x128xf32> -> vector<8x128xf32>
    %c0_25 = arith.constant 0 : index
    %c0_26 = arith.constant 0 : index
    %48 = vector.load %arg8[%c0_25, %c0_26] : memref<8x1xf32, #tpu.memory_space<vmem>>, vector<8x1xf32>
    %49 = vector.broadcast %48 : vector<8x1xf32> to vector<8x128xf32>
    %50 = arith.addf %47, %49 : vector<8x128xf32>
    %51 = arith.mulf %50, %50 : vector<8x128xf32>
    %52 = tpu.concatenate %50, %51 in 1 : vector<8x128xf32>, vector<8x128xf32> -> vector<8x256xf32>
    %c0_27 = arith.constant 0 : index
    %c0_28 = arith.constant 0 : index
    %53 = vector.load %arg11[%c0_27, %c0_28] : memref<4x8xf32, #tpu.memory_space<vmem>>, vector<4x8xf32>
    %cst_29 = arith.constant dense<0.000000e+00> : vector<4x256xf32>
    %54 = tpu.matmul %53, %52, %cst_29 {dimension_numbers = #tpu.dot_dimension_numbers<[1], [0], [0], [1], [0, 0, 1, 1], [], []>} : vector<4x8xf32>, vector<8x256xf32>, vector<4x256xf32> -> vector<4x256xf32>
    %55 = vector.extract_strided_slice %54 {offsets = [0, 0], sizes = [4, 128], strides = [1, 1]} : vector<4x256xf32> to vector<4x128xf32>
    %cst_30 = arith.constant dense<0.000000e+00> : vector<4xf32>
    %56 = vector.multi_reduction <add>, %55, %cst_30 [1] : vector<4x128xf32> to vector<4xf32>
    %57 = vector.shape_cast %56 : vector<4xf32> to vector<4x1xf32>
    %cst_31 = arith.constant 7.812500e-03 : f32
    %58 = vector.broadcast %cst_31 : f32 to vector<4x1xf32>
    %59 = arith.mulf %57, %58 : vector<4x1xf32>
    %60 = vector.extract_strided_slice %54 {offsets = [0, 128], sizes = [4, 128], strides = [1, 1]} : vector<4x256xf32> to vector<4x128xf32>
    %cst_32 = arith.constant dense<0.000000e+00> : vector<4xf32>
    %61 = vector.multi_reduction <add>, %60, %cst_32 [1] : vector<4x128xf32> to vector<4xf32>
    %62 = vector.shape_cast %61 : vector<4xf32> to vector<4x1xf32>
    %cst_33 = arith.constant 7.812500e-03 : f32
    %63 = vector.broadcast %cst_33 : f32 to vector<4x1xf32>
    %64 = arith.mulf %62, %63 : vector<4x1xf32>
    %65 = arith.mulf %59, %59 : vector<4x1xf32>
    %66 = arith.subf %64, %65 : vector<4x1xf32>
    %cst_34 = arith.constant 0.000000e+00 : f32
    %67 = vector.broadcast %cst_34 : f32 to vector<4x1xf32>
    %68 = arith.maximumf %66, %67 : vector<4x1xf32>
    %c0_35 = arith.constant 0 : index
    %c0_36 = arith.constant 0 : index
    %69 = vector.load %arg9[%c0_35, %c0_36] : memref<4x1xf32, #tpu.memory_space<vmem>>, vector<4x1xf32>
    %cst_37 = arith.constant 9.99999974E-6 : f32
    %70 = vector.broadcast %cst_37 : f32 to vector<4x1xf32>
    %71 = arith.addf %68, %70 : vector<4x1xf32>
    %72 = math.rsqrt %71 : vector<4x1xf32>
    %73 = arith.mulf %69, %72 : vector<4x1xf32>
    %c0_38 = arith.constant 0 : index
    %c0_39 = arith.constant 0 : index
    %74 = vector.load %arg10[%c0_38, %c0_39] : memref<4x1xf32, #tpu.memory_space<vmem>>, vector<4x1xf32>
    %75 = arith.mulf %59, %73 : vector<4x1xf32>
    %76 = arith.subf %74, %75 : vector<4x1xf32>
    %c0_40 = arith.constant 0 : index
    %c0_41 = arith.constant 0 : index
    %77 = vector.load %arg12[%c0_40, %c0_41] : memref<8x4xf32, #tpu.memory_space<vmem>>, vector<8x4xf32>
    %78 = vector.shape_cast %73 : vector<4x1xf32> to vector<4x1xf32>
    %79 = vector.broadcast %78 : vector<4x1xf32> to vector<4x128xf32>
    %80 = vector.shape_cast %76 : vector<4x1xf32> to vector<4x1xf32>
    %81 = vector.broadcast %80 : vector<4x1xf32> to vector<4x128xf32>
    %82 = tpu.concatenate %79, %81 in 1 : vector<4x128xf32>, vector<4x128xf32> -> vector<4x256xf32>
    %cst_42 = arith.constant dense<0.000000e+00> : vector<8x256xf32>
    %83 = tpu.matmul %77, %82, %cst_42 {dimension_numbers = #tpu.dot_dimension_numbers<[1], [0], [0], [1], [0, 0, 1, 1], [], []>} : vector<8x4xf32>, vector<4x256xf32>, vector<8x256xf32> -> vector<8x256xf32>
    %84 = vector.extract_strided_slice %83 {offsets = [0, 0], sizes = [8, 128], strides = [1, 1]} : vector<8x256xf32> to vector<8x128xf32>
    %85 = arith.mulf %50, %84 : vector<8x128xf32>
    %86 = vector.extract_strided_slice %83 {offsets = [0, 128], sizes = [8, 128], strides = [1, 1]} : vector<8x256xf32> to vector<8x128xf32>
    %87 = arith.addf %85, %86 : vector<8x128xf32>
    %cst_43 = arith.constant 0.000000e+00 : f32
    %88 = vector.broadcast %cst_43 : f32 to vector<8x128xf32>
    %89 = arith.maximumf %87, %88 : vector<8x128xf32>
    %c0_44 = arith.constant 0 : index
    %c0_45 = arith.constant 0 : index
    %90 = vector.load %arg13[%c0_44, %c0_45] : memref<8x8xf32, #tpu.memory_space<vmem>>, vector<8x8xf32>
    %cst_46 = arith.constant dense<0.000000e+00> : vector<8x128xf32>
    %91 = tpu.matmul %90, %89, %cst_46 {dimension_numbers = #tpu.dot_dimension_numbers<[1], [0], [0], [1], [0, 0, 1, 1], [], []>} : vector<8x8xf32>, vector<8x128xf32>, vector<8x128xf32> -> vector<8x128xf32>
    %c0_47 = arith.constant 0 : index
    %c0_48 = arith.constant 0 : index
    %92 = vector.load %arg14[%c0_47, %c0_48] : memref<8x1xf32, #tpu.memory_space<vmem>>, vector<8x1xf32>
    %93 = vector.broadcast %92 : vector<8x1xf32> to vector<8x128xf32>
    %94 = arith.addf %91, %93 : vector<8x128xf32>
    %95 = arith.mulf %94, %94 : vector<8x128xf32>
    %96 = tpu.concatenate %94, %95 in 0 : vector<8x128xf32>, vector<8x128xf32> -> vector<16x128xf32>
    %c0_49 = arith.constant 0 : index
    %c0_50 = arith.constant 0 : index
    %97 = vector.load %arg15[%c0_49, %c0_50] : memref<128x2xf32, #tpu.memory_space<vmem>>, vector<128x2xf32>
    %cst_51 = arith.constant dense<0.000000e+00> : vector<16x2xf32>
    %98 = tpu.matmul %96, %97, %cst_51 {dimension_numbers = #tpu.dot_dimension_numbers<[1], [0], [0], [1], [0, 0, 1, 1], [], []>} : vector<16x128xf32>, vector<128x2xf32>, vector<16x2xf32> -> vector<16x2xf32>
    %99 = vector.extract_strided_slice %98 {offsets = [0, 0], sizes = [8, 2], strides = [1, 1]} : vector<16x2xf32> to vector<8x2xf32>
    %cst_52 = arith.constant 1.562500e-02 : f32
    %100 = vector.broadcast %cst_52 : f32 to vector<8x2xf32>
    %101 = arith.mulf %99, %100 : vector<8x2xf32>
    %102 = vector.extract_strided_slice %98 {offsets = [8, 0], sizes = [8, 2], strides = [1, 1]} : vector<16x2xf32> to vector<8x2xf32>
    %cst_53 = arith.constant 1.562500e-02 : f32
    %103 = vector.broadcast %cst_53 : f32 to vector<8x2xf32>
    %104 = arith.mulf %102, %103 : vector<8x2xf32>
    %105 = arith.mulf %101, %101 : vector<8x2xf32>
    %106 = arith.subf %104, %105 : vector<8x2xf32>
    %cst_54 = arith.constant 0.000000e+00 : f32
    %107 = vector.broadcast %cst_54 : f32 to vector<8x2xf32>
    %108 = arith.maximumf %106, %107 : vector<8x2xf32>
    %cst_55 = arith.constant 9.99999974E-6 : f32
    %109 = vector.broadcast %cst_55 : f32 to vector<8x2xf32>
    %110 = arith.addf %108, %109 : vector<8x2xf32>
    %111 = math.rsqrt %110 : vector<8x2xf32>
    %112 = tpu.concatenate %101, %111 in 0 : vector<8x2xf32>, vector<8x2xf32> -> vector<16x2xf32>
    %c0_56 = arith.constant 0 : index
    %c0_57 = arith.constant 0 : index
    %113 = vector.load %arg16[%c0_56, %c0_57] : memref<2x128xf32, #tpu.memory_space<vmem>>, vector<2x128xf32>
    %cst_58 = arith.constant dense<0.000000e+00> : vector<16x128xf32>
    %114 = tpu.matmul %112, %113, %cst_58 {dimension_numbers = #tpu.dot_dimension_numbers<[1], [0], [0], [1], [0, 0, 1, 1], [], []>} : vector<16x2xf32>, vector<2x128xf32>, vector<16x128xf32> -> vector<16x128xf32>
    %115 = vector.extract_strided_slice %114 {offsets = [0, 0], sizes = [8, 128], strides = [1, 1]} : vector<16x128xf32> to vector<8x128xf32>
    %116 = arith.subf %94, %115 : vector<8x128xf32>
    %117 = vector.extract_strided_slice %114 {offsets = [8, 0], sizes = [8, 128], strides = [1, 1]} : vector<16x128xf32> to vector<8x128xf32>
    %118 = arith.mulf %116, %117 : vector<8x128xf32>
    %cst_59 = arith.constant 0.000000e+00 : f32
    %119 = vector.broadcast %cst_59 : f32 to vector<8x128xf32>
    %120 = arith.cmpf oge, %118, %119 : vector<8x128xf32>
    %cst_60 = arith.constant 1.000000e-01 : f32
    %121 = vector.broadcast %cst_60 : f32 to vector<8x128xf32>
    %122 = arith.mulf %121, %118 : vector<8x128xf32>
    %123 = arith.select %120, %118, %122 : vector<8x128xi1>, vector<8x128xf32>
    %c0_61 = arith.constant 0 : index
    %c0_62 = arith.constant 0 : index
    %124 = vector.load %arg17[%c0_61, %c0_62] : memref<8x128xf32, #tpu.memory_space<vmem>>, vector<8x128xf32>
    tpu.vector_store %arg17[%c0_61, %c0_62], %123 {strides = array<i32>} : memref<8x128xf32, #tpu.memory_space<vmem>>, vector<8x128xf32>,
    return
  }
}

</mosaic_0001>

<bundles_post_ra>
// kernel: forward.1
= control target key start
LH: loop header
LB: loop body
LE: loop exit
PB: predicated region body
PF: predicated region fallthrough
CT: control target
= control target key end

     0   :  { %v1804_v3 = vmov 0   ;;  %vm853_vm0 = vcmask 1043456   ;;  %vm905_vm4 = vcmask 31744   ;;  %vm1166_vm5 = vcmask 64512   ;;  %s2590_s0 = inlined_call_operand.vmem [shape: bf16[512,128], index: 0, kind: input, shape index: {}]   ;;  %s2591_s2 = inlined_call_operand.vmem [shape: f32[128,1], index: 2, kind: input, shape index: {}]   ;;  %s2592_s1 = inlined_call_operand.vmem [shape: bf16[128,512], index: 1, kind: input, shape index: {}]   ;;  %s2593_s5 = inlined_call_operand.vmem [shape: f32[4,128], index: 5, kind: input, shape index: {}]   ;;  %s2594_s3 = inlined_call_operand.vmem [shape: f32[4,1], index: 3, kind: input, shape index: {}, may-alias: {3,9}]   ;;  %s2595_s4 = inlined_call_operand.vmem [shape: f32[4,1], index: 4, kind: input, shape index: {}, may-alias: {4,10}]   ;;  %s2596_s8 = inlined_call_operand.vmem [shape: f32[8,1], index: 8, kind: input, shape index: {}]   ;;  %s2597_s6 = inlined_call_operand.vmem [shape: f32[128,4], index: 6, kind: input, shape index: {}]   ;;  %s2598_s7 = inlined_call_operand.vmem [shape: bf16[8,128], index: 7, kind: input, shape index: {}]   ;;  %s2599_s11 = inlined_call_operand.vmem [shape: f32[4,8], index: 11, kind: input, shape index: {}]   ;;  %s2600_s9 = inlined_call_operand.vmem [shape: f32[4,1], index: 9, kind: input, shape index: {}, may-alias: {3,9}]   ;;  %s2601_s10 = inlined_call_operand.vmem [shape: f32[4,1], index: 10, kind: input, shape index: {}, may-alias: {4,10}]   ;;  %s2602_s14 = inlined_call_operand.vmem [shape: f32[8,1], index: 14, kind: input, shape index: {}]   ;;  %s2603_s12 = inlined_call_operand.vmem [shape: f32[8,4], index: 12, kind: input, shape index: {}]   ;;  %s2604_s15 = inlined_call_operand.vmem [shape: f32[128,2], index: 15, kind: input, shape index: {}]   ;;  %s2605_s13 = inlined_call_operand.vmem [shape: f32[8,8], index: 13, kind: input, shape index: {}]   ;;  %s2606_s16 = inlined_call_operand.vmem [shape: f32[2,128], index: 16, kind: input, shape index: {}]   ;;  %s2607_s17 = inlined_call_operand.vmem [shape: f32[8,128], index: 17, kind: output, shape index: {}]  }
   0x1   :  { %2610 = sst [smem:[#allocation4_spill]] %s2590_s0  ;;  %1795 = vset.pattern.permute.xlu0 %v1804_v3  ;;  %1796 = vset.pattern.permute.xlu1 %v1804_v3  ;;  %v1429_v41 = vld [vmem:[%s2592_s1] sm:$0xf]  ;;  %v1761_v42 = vld [vmem:[%s2592_s1 + $0xc] sm:$0xf0]  ;;  %vm1390_vm9 = vcmask 1041408  }
   0x2   :  { %2611 = sst [smem:[#allocation5_spill]] %s2591_s2  ;;  %1797 = vset.pattern.permute.xlu2 %v1804_v3  ;;  %v1759_v44 = vld [vmem:[%s2592_s1 + $0x4] sm:$0xf]  ;;  %v1431_v45 = vld [vmem:[%s2592_s1 + $0x10] sm:$0xf0]  ;;  %v1430_v50 = vor.u32 %v1761_v42, %v1429_v41  ;;  %vm1383_vm10 = vcmask 15360  }
   0x3   :  { %s2612_s26 = sld [smem:[#allocation4_spill]]  ;;  %v1437_v46 = vld [vmem:[%s2592_s1 + $0x8] sm:$0xf]  ;;  %v1762_v47 = vld [vmem:[%s2592_s1 + $0x14] sm:$0xf0]  ;;  %v1434_v51 = vor.u32 %v1759_v44, %v1431_v45 }
   0x4   :  { %s2613_s20 = sld [smem:[#allocation5_spill]]  ;;  %v1760_v48 = vld [vmem:[%s2592_s1 + $0xc] sm:$0xf]  ;;  %v1439_v49 = vld [vmem:[%s2592_s1 + $0x18] sm:$0xf0]  ;;  %v1438_v53 = vor.u32 %v1762_v47, %v1437_v46 }
   0x5   :  { %v1442_v54 = vor.u32 %v1760_v48, %v1439_v49  ;;  %v1445_v59 = vld [vmem:[%s2592_s1 + $0x20] sm:$0xf]  ;;  %v1765_v60 = vld [vmem:[%s2592_s1 + $0x2c] sm:$0xf0]  ;;  %v1763_v62 = vld [vmem:[%s2592_s1 + $0x24] sm:$0xf] }
   0x6   :  { %v1447_v63 = vld [vmem:[%s2592_s1 + $0x30] sm:$0xf0]  ;;  %v1455_v3 = vld [vmem:[%s2592_s1 + $0x38] sm:$0xf0]  ;;  %v1509_v45 = vld [vmem:[%s2592_s1 + $0xa0] sm:$0xf] }
   0x7   :  { %v1781_v46 = vld [vmem:[%s2592_s1 + $0xac] sm:$0xf0]  ;;  %v1779_v47 = vld [vmem:[%s2592_s1 + $0xa4] sm:$0xf]  ;;  %v1511_v48 = vld [vmem:[%s2592_s1 + $0xb0] sm:$0xf0] }
   0x8   :  { %v1517_v49 = vld [vmem:[%s2592_s1 + $0xa8] sm:$0xf] }
   0x9   :  { %v1734_v0 = vld [vmem:[%s2612_s26 + $0x38] sm:$0xff]  ;;  %v1733_v6 = vld [vmem:[%s2612_s26 + $0x30] sm:$0xff]  ;;  %v1732_v10 = vld [vmem:[%s2612_s26 + $0x28] sm:$0xff] }
   0xa   :  { %v1742_v1 = vld [vmem:[%s2612_s26 + $0x78] sm:$0xff]  ;;  %600 = vmatpush.bf16.msra.mxu0 %v1734_v0  ;;  %v1741_v7 = vld [vmem:[%s2612_s26 + $0x70] sm:$0xff]  ;;  %v1740_v11 = vld [vmem:[%s2612_s26 + $0x68] sm:$0xff] }
   0xb   :  { %v1750_v2 = vld [vmem:[%s2612_s26 + $0xb8] sm:$0xff]  ;;  %649 = vmatpush.bf16.msra.mxu1 %v1742_v1  ;;  %v1749_v8 = vld [vmem:[%s2612_s26 + $0xb0] sm:$0xff]  ;;  %v1748_v12 = vld [vmem:[%s2612_s26 + $0xa8] sm:$0xff] }
   0xc   :  { %v1758_v4 = vld [vmem:[%s2612_s26 + $0xf8] sm:$0xff]  ;;  %698 = vmatpush.bf16.msra.mxu2 %v1750_v2  ;;  %v1757_v9 = vld [vmem:[%s2612_s26 + $0xf0] sm:$0xff]  ;;  %v1756_v13 = vld [vmem:[%s2612_s26 + $0xe8] sm:$0xff] }
   0xd   :  { %v167_v5 = vld [vmem:[%s2613_s20 + $0x78] sm:$0xff]  ;;  %747 = vmatpush.bf16.msra.mxu3 %v1758_v4  ;;  %v166_v14 = vld [vmem:[%s2613_s20 + $0x70] sm:$0xff]  ;;  %v1731_v15 = vld [vmem:[%s2612_s26 + $0x20] sm:$0xff]  ;;  %v1446_v4 = vor.u32 %v1765_v60, %v1445_v59 }
   0xe   :  { %245 = vperm.xlu0 %1795, %v167_v5   ;;  %601 = vmatpush.bf16.msra.mxu0 %v1733_v6  ;;  %v1739_v16 = vld [vmem:[%s2612_s26 + $0x60] sm:$0xff]  ;;  %v165_v17 = vld [vmem:[%s2613_s20 + $0x68] sm:$0xff]  ;;  %v1730_v20 = vld [vmem:[%s2612_s26 + $0x18] sm:$0xff]  ;;  %v1450_v5 = vor.u32 %v1763_v62, %v1447_v63 }
   0xf   :  { %650 = vmatpush.bf16.msra.mxu1 %v1741_v7  ;;  %v1747_v18 = vld [vmem:[%s2612_s26 + $0xa0] sm:$0xff]  ;;  %235 = vperm.xlu1 %1796, %v165_v17   ;;  %v1738_v21 = vld [vmem:[%s2612_s26 + $0x58] sm:$0xff]  ;;  %v161_v25 = vld [vmem:[%s2613_s20 + $0x48] sm:$0xff] }
  0x10   :  { %699 = vmatpush.bf16.msra.mxu2 %v1749_v8  ;;  %v1755_v19 = vld [vmem:[%s2612_s26 + $0xe0] sm:$0xff]  ;;  %v1746_v22 = vld [vmem:[%s2612_s26 + $0x98] sm:$0xff]  ;;  %v1729_v27 = vld [vmem:[%s2612_s26 + $0x10] sm:$0xff] }
  0x11   :  { %748 = vmatpush.bf16.msra.mxu3 %v1757_v9  ;;  %v1754_v23 = vld [vmem:[%s2612_s26 + $0xd8] sm:$0xff]  ;;  %v164_v26 = vld [vmem:[%s2613_s20 + $0x60] sm:$0xff]  ;;  %v1737_v28 = vld [vmem:[%s2612_s26 + $0x50] sm:$0xff] }
  0x12   :  { %602 = vmatpush.bf16.msra.mxu0 %v1732_v10  ;;  %v163_v24 = vld [vmem:[%s2613_s20 + $0x58] sm:$0xff]  ;;  %v1745_v29 = vld [vmem:[%s2612_s26 + $0x90] sm:$0xff]  ;;  %v1728_v32 = vld [vmem:[%s2612_s26 + $0x8] sm:$0xff] }
  0x13   :  { %651 = vmatpush.bf16.msra.mxu1 %v1740_v11  ;;  %225 = vperm.xlu2 %1797, %v163_v24   ;;  %v1753_v30 = vld [vmem:[%s2612_s26 + $0xd0] sm:$0xff]  ;;  %v1736_v33 = vld [vmem:[%s2612_s26 + $0x48] sm:$0xff]  ;;  %v1727_v37 = vld [vmem:[%s2612_s26] sm:$0xff] }
  0x14   :  { %700 = vmatpush.bf16.msra.mxu2 %v1748_v12  ;;  %v162_v31 = vld [vmem:[%s2613_s20 + $0x50] sm:$0xff]  ;;  %v1744_v34 = vld [vmem:[%s2612_s26 + $0x88] sm:$0xff]  ;;  %v1735_v38 = vld [vmem:[%s2612_s26 + $0x40] sm:$0xff] }
  0x15   :  { %749 = vmatpush.bf16.msra.mxu3 %v1756_v13  ;;  %v1752_v35 = vld [vmem:[%s2612_s26 + $0xc8] sm:$0xff]  ;;  %v158_v36 = vld [vmem:[%s2613_s20 + $0x30] sm:$0xff]  ;;  %v1743_v39 = vld [vmem:[%s2612_s26 + $0x80] sm:$0xff] }
  0x16   :  { %240 = vperm.xlu0 %1795, %v166_v14   ;;  %603 = vmatpush.bf16.msra.mxu0 %v1731_v15  ;;  %v1751_v40 = vld [vmem:[%s2612_s26 + $0xc0] sm:$0xff]  ;;  %v159_v52 = vld [vmem:[%s2613_s20 + $0x38] sm:$0xff]  ;;  %v157_v56 = vld [vmem:[%s2613_s20 + $0x28] sm:$0xff] }
  0x17   :  { %652 = vmatpush.bf16.msra.mxu1 %v1739_v16  ;;  %230 = vperm.xlu1 %1796, %v164_v26   ;;  %v160_v43 = vld [vmem:[%s2613_s20 + $0x40] sm:$0xff]  ;;  %v155_v55 = vld [vmem:[%s2613_s20 + $0x18] sm:$0xff]  ;;  %v154_v61 = vld [vmem:[%s2613_s20 + $0x10] sm:$0xff] }
  0x18   :  { %701 = vmatpush.bf16.msra.mxu2 %v1747_v18  ;;  %v156_v57 = vld [vmem:[%s2613_s20 + $0x20] sm:$0xff]  ;;  %v1453_v0 = vld [vmem:[%s2592_s1 + $0x28] sm:$0xf]  ;;  %v1766_v1 = vld [vmem:[%s2592_s1 + $0x34] sm:$0xf0] }
  0x19   :  { %750 = vmatpush.bf16.msra.mxu3 %v1755_v19  ;;  %v152_v58 = vld [vmem:[%s2613_s20] sm:$0xff]  ;;  %v1764_v2 = vld [vmem:[%s2592_s1 + $0x2c] sm:$0xf]  ;;  %v1454_v7 = vor.u32 %v1766_v1, %v1453_v0  ;;  %v1769_v10 = vld [vmem:[%s2592_s1 + $0x4c] sm:$0xf0] }
  0x1a   :  { %604 = vmatpush.bf16.msra.mxu0 %v1730_v20  ;;  %v153_v6 = vld [vmem:[%s2613_s20 + $0x8] sm:$0xff]  ;;  %v1458_v8 = vor.u32 %v1764_v2, %v1455_v3  ;;  %v1461_v9 = vld [vmem:[%s2592_s1 + $0x40] sm:$0xf]  ;;  %v1767_v11 = vld [vmem:[%s2592_s1 + $0x44] sm:$0xf] }
  0x1b   :  { %653 = vmatpush.bf16.msra.mxu1 %v1738_v21  ;;  %220 = vperm.xlu2 %1797, %v162_v31   ;;  %v1463_v12 = vld [vmem:[%s2592_s1 + $0x50] sm:$0xf0]  ;;  %v1469_v13 = vld [vmem:[%s2592_s1 + $0x48] sm:$0xf]  ;;  %v1770_v14 = vld [vmem:[%s2592_s1 + $0x54] sm:$0xf0]  ;;  %v1462_v17 = vor.u32 %v1769_v10, %v1461_v9 }
  0x1c   :  { %702 = vmatpush.bf16.msra.mxu2 %v1746_v22  ;;  %v1768_v15 = vld [vmem:[%s2592_s1 + $0x4c] sm:$0xf]  ;;  %v1471_v16 = vld [vmem:[%s2592_s1 + $0x58] sm:$0xf0]  ;;  %v1466_v18 = vor.u32 %v1767_v11, %v1463_v12  ;;  %v1470_v19 = vor.u32 %v1770_v14, %v1469_v13  ;;  %v1477_v21 = vld [vmem:[%s2592_s1 + $0x60] sm:$0xf] }
  0x1d   :  { %751 = vmatpush.bf16.msra.mxu3 %v1754_v23  ;;  %v1474_v20 = vor.u32 %v1768_v15, %v1471_v16  ;;  %v1773_v22 = vld [vmem:[%s2592_s1 + $0x6c] sm:$0xf0]  ;;  %v1771_v23 = vld [vmem:[%s2592_s1 + $0x64] sm:$0xf]  ;;  %v1479_v24 = vld [vmem:[%s2592_s1 + $0x70] sm:$0xf0] }
  0x1e   :  { %215 = vperm.xlu0 %1795, %v161_v25   ;;  %605 = vmatpush.bf16.msra.mxu0 %v1729_v27  ;;  %v1485_v25 = vld [vmem:[%s2592_s1 + $0x68] sm:$0xf]  ;;  %v1774_v26 = vld [vmem:[%s2592_s1 + $0x74] sm:$0xf0]  ;;  %v1772_v27 = vld [vmem:[%s2592_s1 + $0x6c] sm:$0xf] }
  0x1f   :  { %654 = vmatpush.bf16.msra.mxu1 %v1737_v28  ;;  %210 = vperm.xlu1 %1796, %v160_v43   ;;  %v1487_v28 = vld [vmem:[%s2592_s1 + $0x78] sm:$0xf0]  ;;  %v1486_v31 = vor.u32 %v1774_v26, %v1485_v25  ;;  %v1783_v59 = vld [vmem:[%s2592_s1 + $0xc4] sm:$0xf]  ;;  %v1527_v60 = vld [vmem:[%s2592_s1 + $0xd0] sm:$0xf0] }
  0x20   :  { %703 = vmatpush.bf16.msra.mxu2 %v1745_v29  ;;  %v1478_v29 = vor.u32 %v1773_v22, %v1477_v21  ;;  %v1786_v62 = vld [vmem:[%s2592_s1 + $0xd4] sm:$0xf0]  ;;  %v1784_v63 = vld [vmem:[%s2592_s1 + $0xcc] sm:$0xf]  ;;  %v1535_v0 = vld [vmem:[%s2592_s1 + $0xd8] sm:$0xf0]  ;;  %v1530_v2 = vor.u32 %v1783_v59, %v1527_v60 }
  0x21   :  { %752 = vmatpush.bf16.msra.mxu3 %v1753_v30  ;;  %v1482_v30 = vor.u32 %v1771_v23, %v1479_v24  ;;  %v1549_v9 = vld [vmem:[%s2592_s1 + $0xe8] sm:$0xf]  ;;  %v1790_v10 = vld [vmem:[%s2592_s1 + $0xf4] sm:$0xf0]  ;;  %v1788_v11 = vld [vmem:[%s2592_s1 + $0xec] sm:$0xf] }
  0x22   :  { %606 = vmatpush.bf16.msra.mxu0 %v1728_v32  ;;  %v1490_v32 = vor.u32 %v1772_v27, %v1487_v28  ;;  %v1551_v12 = vld [vmem:[%s2592_s1 + $0xf8] sm:$0xf0]  ;;  %v1550_v16 = vor.u32 %v1790_v10, %v1549_v9 }
  0x23   :  { %655 = vmatpush.bf16.msra.mxu1 %v1736_v33  ;;  %205 = vperm.xlu2 %1797, %v159_v52   ;;  %v1493_v33 = vld [vmem:[%s2592_s1 + $0x80] sm:$0xf]  ;;  %v1519_v52 = vld [vmem:[%s2592_s1 + $0xb8] sm:$0xf0] }
  0x24   :  { %704 = vmatpush.bf16.msra.mxu2 %v1744_v34  ;;  %v1777_v34 = vld [vmem:[%s2592_s1 + $0x8c] sm:$0xf0] }
  0x25   :  { %753 = vmatpush.bf16.msra.mxu3 %v1752_v35  ;;  %v1775_v35 = vld [vmem:[%s2592_s1 + $0x84] sm:$0xf]  ;;  %v1494_v41 = vor.u32 %v1777_v34, %v1493_v33 }
  0x26   :  { %200 = vperm.xlu0 %1795, %v158_v36   ;;  %607 = vmatpush.bf16.msra.mxu0 %v1727_v37  ;;  %v1495_v36 = vld [vmem:[%s2592_s1 + $0x90] sm:$0xf0]  ;;  %v1501_v37 = vld [vmem:[%s2592_s1 + $0x88] sm:$0xf] }
  0x27   :  { %656 = vmatpush.bf16.msra.mxu1 %v1735_v38  ;;  %195 = vperm.xlu1 %1796, %v157_v56   ;;  %v1778_v38 = vld [vmem:[%s2592_s1 + $0x94] sm:$0xf0]  ;;  %v1498_v42 = vor.u32 %v1775_v35, %v1495_v36 }
  0x28   :  { %705 = vmatpush.bf16.msra.mxu2 %v1743_v39  ;;  %v1776_v39 = vld [vmem:[%s2592_s1 + $0x8c] sm:$0xf]  ;;  %v1502_v43 = vor.u32 %v1778_v38, %v1501_v37 }
  0x29   :  { %754 = vmatpush.bf16.msra.mxu3 %v1751_v40  ;;  %608 = vmatmul.bf16.vlgmr.msra.gmra.mxu0 %v1430_v50  ;;  %v1503_v40 = vld [vmem:[%s2592_s1 + $0x98] sm:$0xf0]  ;;  %v1782_v50 = vld [vmem:[%s2592_s1 + $0xb4] sm:$0xf0] }
  0x2a   :  { %657 = vmatmul.bf16.vlgmr.msra.gmra.mxu1 %v1434_v51  ;;  %v1506_v44 = vor.u32 %v1776_v39, %v1503_v40  ;;  %v1780_v51 = vld [vmem:[%s2592_s1 + $0xac] sm:$0xf] }
  0x2b   :  { %706 = vmatmul.bf16.vlgmr.msra.gmra.mxu2 %v1438_v53  ;;  %190 = vperm.xlu2 %1797, %v156_v57   ;;  %v1510_v53 = vor.u32 %v1781_v46, %v1509_v45  ;;  %v1522_v56 = vor.u32 %v1780_v51, %v1519_v52  ;;  %v1525_v57 = vld [vmem:[%s2592_s1 + $0xc0] sm:$0xf] }
  0x2c   :  { %755 = vmatmul.bf16.vlgmr.msra.gmra.mxu3 %v1442_v54  ;;  %v1514_v54 = vor.u32 %v1779_v47, %v1511_v48 }
  0x2e   :  { %185 = vperm.xlu0 %1795, %v155_v55   ;;  %v1518_v55 = vor.u32 %v1782_v50, %v1517_v49 }
  0x2f   :  { %180 = vperm.xlu1 %1796, %v154_v61   ;;  %v1533_v61 = vld [vmem:[%s2592_s1 + $0xc8] sm:$0xf] }
  0x30   :  { %v1534_v3 = vor.u32 %v1786_v62, %v1533_v61 }
  0x33   :  { %175 = vperm.xlu2 %1797, %v153_v6   ;;  %v1789_v6 = vld [vmem:[%s2592_s1 + $0xec] sm:$0xf0] }
  0x36   :  { %170 = vperm.xlu0 %1795, %v152_v58   ;;  %v1785_v58 = vld [vmem:[%s2592_s1 + $0xcc] sm:$0xf0] }
  0x37   :  { %v1526_v1 = vor.u32 %v1785_v58, %v1525_v57 }
  0x39   :  { %613 = vmatmul.bf16.gmra.mxu0 %v1446_v4  ;;  %v1538_v4 = vor.u32 %v1784_v63, %v1535_v0 }
  0x3a   :  { %662 = vmatmul.bf16.gmra.mxu1 %v1450_v5  ;;  %v1541_v5 = vld [vmem:[%s2592_s1 + $0xe0] sm:$0xf] }
  0x3b   :  { %711 = vmatmul.bf16.gmra.mxu2 %v1454_v7  ;;  %v1787_v7 = vld [vmem:[%s2592_s1 + $0xe4] sm:$0xf]  ;;  %v1542_v14 = vor.u32 %v1789_v6, %v1541_v5 }
  0x3c   :  { %760 = vmatmul.bf16.gmra.mxu3 %v1458_v8  ;;  %v1543_v8 = vld [vmem:[%s2592_s1 + $0xf0] sm:$0xf0] }
  0x3d   :  { %v1546_v15 = vor.u32 %v1787_v7, %v1543_v8 }
  0x49   :  { %618 = vmatmul.bf16.gmra.mxu0 %v1462_v17  ;;  %v1554_v17 = vor.u32 %v1788_v11, %v1551_v12 }
  0x4a   :  { %667 = vmatmul.bf16.gmra.mxu1 %v1466_v18 }
  0x4b   :  { %716 = vmatmul.bf16.gmra.mxu2 %v1470_v19 }
  0x4c   :  { %765 = vmatmul.bf16.gmra.mxu3 %v1474_v20 }
  0x59   :  { %623 = vmatmul.bf16.gmra.mxu0 %v1478_v29 }
  0x5a   :  { %672 = vmatmul.bf16.gmra.mxu1 %v1482_v30 }
  0x5b   :  { %721 = vmatmul.bf16.gmra.mxu2 %v1486_v31 }
  0x5c   :  { %770 = vmatmul.bf16.gmra.mxu3 %v1490_v32 }
  0x69   :  { %628 = vmatmul.bf16.gmra.mxu0 %v1494_v41 }
  0x6a   :  { %677 = vmatmul.bf16.gmra.mxu1 %v1498_v42 }
  0x6b   :  { %726 = vmatmul.bf16.gmra.mxu2 %v1502_v43 }
  0x6c   :  { %775 = vmatmul.bf16.gmra.mxu3 %v1506_v44 }
  0x6d   :  { %v2235_v19 = vpop.permute.xlu2 %225 }
  0x75   :  { %v2253_v28 = vpop.permute.xlu2 %220 }
  0x79   :  { %633 = vmatmul.bf16.gmra.mxu0 %v1510_v53 }
  0x7a   :  { %682 = vmatmul.bf16.gmra.mxu1 %v1514_v54 }
  0x7b   :  { %731 = vmatmul.bf16.gmra.mxu2 %v1518_v55 }
  0x7c   :  { %780 = vmatmul.bf16.gmra.mxu3 %v1522_v56 }
  0x7d   :  { %v206_v35 = vpop.permute.xlu2 %205 }
  0x80   :  { %v2231_v13 = vpop.permute.xlu0 %245 }
  0x81   :  { %v2243_v23 = vpop.permute.xlu1 %235 }
  0x85   :  { %v191_v44 = vpop.permute.xlu2 %190 }
  0x88   :  { %v2233_v18 = vpop.permute.xlu0 %240 }
  0x89   :  { %638 = vmatmul.bf16.gmra.mxu0 %v1526_v1  ;;  %v2263_v34 = vpop.permute.xlu1 %230 }
  0x8a   :  { %687 = vmatmul.bf16.gmra.mxu1 %v1530_v2 }
  0x8b   :  { %736 = vmatmul.bf16.gmra.mxu2 %v1534_v3 }
  0x8c   :  { %785 = vmatmul.bf16.gmra.mxu3 %v1538_v4 }
  0x90   :  { %v2241_v22 = vpop.permute.xlu0 %215 }
  0x91   :  { %v211_v43 = vpop.permute.xlu1 %210 }
  0x98   :  { %v201_v29 = vpop.permute.xlu0 %200 }
  0x99   :  { %643 = vmatmul.bf16.gmra.mxu0 %v1542_v14  ;;  %v196_v51 = vpop.permute.xlu1 %195 }
  0x9a   :  { %692 = vmatmul.bf16.gmra.mxu1 %v1546_v15 }
  0x9b   :  { %741 = vmatmul.bf16.gmra.mxu2 %v1550_v16 }
  0x9c   :  { %790 = vmatmul.bf16.gmra.mxu3 %v1554_v17 }
  0xa0   :  { %v186_v36 = vpop.permute.xlu0 %185 }
  0xa6   :  { %v2237_v20 = vpop.f32.mrf.mxu0 }
  0xa7   :  { %v2239_v21 = vpop.f32.mrf.mxu1 }
  0xae   :  { %v2245_v24 = vpop.f32.mrf.mxu2  ;;  %v2249_v26 = vpop.f32.mrf.mxu0 }
  0xaf   :  { %v2247_v25 = vpop.f32.mrf.mxu3  ;;  %v2251_v27 = vpop.f32.mrf.mxu1 }
  0xb0   :  { %2614 = vst [vmem:[#allocation2_spill] sm:$0xff] %v2247_v25 }
  0xb6   :  { %v2255_v30 = vpop.f32.mrf.mxu2  ;;  %v2259_v32 = vpop.f32.mrf.mxu0 }
  0xb7   :  { %v2257_v31 = vpop.f32.mrf.mxu3  ;;  %v2261_v33 = vpop.f32.mrf.mxu1 }
  0xb8   :  { %2615 = vst [vmem:[#allocation3_spill] sm:$0xff] %v2257_v31 }
  0xbe   :  { %v2265_v37 = vpop.f32.mrf.mxu2  ;;  %v616_v39 = vpop.f32.mrf.mxu0 }
  0xbf   :  { %v2267_v38 = vpop.f32.mrf.mxu3  ;;  %v665_v40 = vpop.f32.mrf.mxu1  ;;  %v617_v41 = vadd.f32 %v616_v39, %v186_v36 }
  0xc1   :  { %v2269_v42 = vadd.f32 %v665_v40, %v617_v41 }
  0xc6   :  { %v2271_v45 = vpop.f32.mrf.mxu2  ;;  %v619_v47 = vpop.f32.mrf.mxu0 }
  0xc7   :  { %v2273_v46 = vpop.f32.mrf.mxu3  ;;  %v668_v48 = vpop.f32.mrf.mxu1  ;;  %v620_v49 = vadd.f32 %v619_v47, %v191_v44 }
  0xc9   :  { %v669_v50 = vadd.f32 %v668_v48, %v620_v49 }
  0xce   :  { %v717_v52 = vpop.f32.mrf.mxu2  ;;  %v621_v55 = vpop.f32.mrf.mxu0 }
  0xcf   :  { %v766_v53 = vpop.f32.mrf.mxu3  ;;  %v718_v54 = vadd.f32 %v717_v52, %v669_v50  ;;  %v670_v56 = vpop.f32.mrf.mxu1  ;;  %v622_v57 = vadd.f32 %v621_v55, %v196_v51 }
  0xd1   :  { %v2275_v58 = vadd.f32 %v766_v53, %v718_v54  ;;  %v671_v59 = vadd.f32 %v670_v56, %v622_v57 }
  0xd6   :  { %v719_v60 = vpop.f32.mrf.mxu2  ;;  %v624_v63 = vpop.f32.mrf.mxu0 }
  0xd7   :  { %v768_v61 = vpop.f32.mrf.mxu3  ;;  %v720_v62 = vadd.f32 %v719_v60, %v671_v59  ;;  %v673_v0 = vpop.f32.mrf.mxu1  ;;  %v625_v1 = vadd.f32 %v624_v63, %v201_v29 }
  0xd9   :  { %v2277_v2 = vadd.f32 %v768_v61, %v720_v62  ;;  %v674_v3 = vadd.f32 %v673_v0, %v625_v1 }
  0xde   :  { %v722_v4 = vpop.f32.mrf.mxu2  ;;  %v626_v7 = vpop.f32.mrf.mxu0 }
  0xdf   :  { %v771_v5 = vpop.f32.mrf.mxu3  ;;  %v723_v6 = vadd.f32 %v722_v4, %v674_v3  ;;  %v675_v8 = vpop.f32.mrf.mxu1  ;;  %v627_v9 = vadd.f32 %v626_v7, %v206_v35 }
  0xe1   :  { %v2279_v10 = vadd.f32 %v771_v5, %v723_v6  ;;  %v676_v11 = vadd.f32 %v675_v8, %v627_v9 }
  0xe6   :  { %v724_v12 = vpop.f32.mrf.mxu2  ;;  %v629_v16 = vpop.f32.mrf.mxu0 }
  0xe7   :  { %v773_v14 = vpop.f32.mrf.mxu3  ;;  %v725_v15 = vadd.f32 %v724_v12, %v676_v11  ;;  %v678_v17 = vpop.f32.mrf.mxu1  ;;  %v630_v36 = vadd.f32 %v629_v16, %v211_v43 }
  0xe9   :  { %v2281_v39 = vadd.f32 %v773_v14, %v725_v15  ;;  %v679_v29 = vadd.f32 %v678_v17, %v630_v36 }
  0xee   :  { %v727_v40 = vpop.f32.mrf.mxu2  ;;  %v631_v47 = vpop.f32.mrf.mxu0 }
  0xef   :  { %v776_v41 = vpop.f32.mrf.mxu3  ;;  %v728_v44 = vadd.f32 %v727_v40, %v679_v29  ;;  %v680_v48 = vpop.f32.mrf.mxu1 }
  0xf1   :  { %v2283_v49 = vadd.f32 %v776_v41, %v728_v44 }
  0xf6   :  { %v729_v35 = vpop.f32.mrf.mxu2  ;;  %v634_v51 = vpop.f32.mrf.mxu0 }
  0xf7   :  { %v2285_v50 = vpop.f32.mrf.mxu3  ;;  %v683_v52 = vpop.f32.mrf.mxu1  ;;  %v635_v16 = vadd.f32 %v634_v51, %v2253_v28 }
  0xfe   :  { %v732_v53 = vpop.f32.mrf.mxu2  ;;  %v636_v55 = vpop.f32.mrf.mxu0 }
  0xff   :  { %v781_v54 = vpop.f32.mrf.mxu3  ;;  %v685_v56 = vpop.f32.mrf.mxu1  ;;  %v637_v17 = vadd.f32 %v636_v55, %v2235_v19 }
 0x106   :  { %v734_v43 = vpop.f32.mrf.mxu2  ;;  %v639_v59 = vpop.f32.mrf.mxu0 }
 0x107   :  { %v783_v57 = vpop.f32.mrf.mxu3  ;;  %v688_v60 = vpop.f32.mrf.mxu1  ;;  %v640_v11 = vadd.f32 %v639_v59, %v2263_v34  ;;  %v684_v34 = vadd.f32 %v683_v52, %v635_v16 }
 0x109   :  { %v689_v29 = vadd.f32 %v688_v60, %v640_v11 }
 0x10e   :  { %v737_v61 = vpop.f32.mrf.mxu2  ;;  %v641_v63 = vpop.f32.mrf.mxu0 }
 0x10f   :  { %v786_v62 = vpop.f32.mrf.mxu3  ;;  %v690_v0 = vpop.f32.mrf.mxu1  ;;  %v642_v12 = vadd.f32 %v641_v63, %v2243_v23  ;;  %v686_v23 = vadd.f32 %v685_v56, %v637_v17  ;;  %v738_v63 = vadd.f32 %v737_v61, %v689_v29 }
 0x111   :  { %v691_v40 = vadd.f32 %v690_v0, %v642_v12  ;;  %v735_v28 = vadd.f32 %v734_v43, %v686_v23  ;;  %v2303_v60 = vadd.f32 %v786_v62, %v738_v63  ;;  %v176_v62 = vpop.permute.xlu2 %175  ;;  %v2617_v12 = vld [vmem:[#allocation2_spill] sm:$0xff] }
 0x113   :  { %v2308_v52 = vadd.f32 %v783_v57, %v735_v28  ;;  %v171_v57 = vpop.permute.xlu0 %170 }
 0x114   :  { %v610_v0 = vadd.f32 %v2237_v20, %v171_v57  ;;  %v878_v57 = vld [vmem:[%s2595_s4] sm:$0xf] }
 0x116   :  { %v739_v1 = vpop.f32.mrf.mxu2  ;;  %v644_v4 = vpop.f32.mrf.mxu0  ;;  %v659_v20 = vadd.f32 %v2239_v21, %v610_v0  ;;  %v801_v21 = vmul.f32 %v2277_v2, %v2277_v2  ;;  %v882_v0 = vld [vmem:[%s2597_s6 + $0x8] sm:$0xff] }
 0x117   :  { %v788_v3 = vpop.f32.mrf.mxu3  ;;  %v693_v5 = vpop.f32.mrf.mxu1  ;;  %v645_v8 = vadd.f32 %v644_v4, %v2233_v18  ;;  %v740_v31 = vadd.f32 %v739_v1, %v691_v40  ;;  %v632_v4 = vadd.f32 %v631_v47, %v2241_v22  ;;  %v612_v1 = vadd.f32 %v2249_v26, %v176_v62  ;;  %v881_v62 = vld [vmem:[%s2597_s6] sm:$0xff] }
 0x119   :  { %v694_v15 = vadd.f32 %v693_v5, %v645_v8  ;;  %v2298_v19 = vadd.f32 %v788_v3, %v740_v31  ;;  %v681_v55 = vadd.f32 %v680_v48, %v632_v4  ;;  %v808_v48 = vmul.f32 %v2303_v60, %v2303_v60 }
 0x11a   :  { %v661_v26 = vadd.f32 %v2251_v27, %v612_v1  ;;  %v802_v8 = vmul.f32 %v2279_v10, %v2279_v10  ;;  %v708_v27 = vadd.f32 %v2245_v24, %v659_v20  ;;  %v885_v1 = vld [vmem:[%s2597_s6 + $0x20] sm:$0xff]  ;;  %v887_v20 = vld [vmem:[%s2597_s6 + $0x30] sm:$0xff] }
 0x11b   :  { %v730_v47 = vadd.f32 %v729_v35, %v681_v55  ;;  %v809_v31 = vmul.f32 %v2298_v19, %v2298_v19  ;;  %v807_v35 = vmul.f32 %v2308_v52, %v2308_v52 }
 0x11c   :  { %v2369_v24 = vadd.f32 %v2617_v12, %v708_v27  ;;  %v893_v27 = vld [vmem:[%s2597_s6 + $0x60] sm:$0xff] }
 0x11d   :  { %v2319_v43 = vadd.f32 %v2285_v50, %v730_v47  ;;  %v865_v47 = vld [vmem:[%s2594_s3] sm:$0xf] }
 0x11e   :  { %v742_v6 = vpop.f32.mrf.mxu2  ;;  %v646_v9 = vpop.f32.mrf.mxu0  ;;  %v796_v16 = vmul.f32 %v2369_v24, %v2369_v24 }
 0x11f   :  { %v791_v7 = vpop.f32.mrf.mxu3  ;;  %v647_v14 = vadd.f32 %v646_v9, %v2231_v13  ;;  %v695_v36 = vpop.f32.mrf.mxu1  ;;  %v743_v41 = vadd.f32 %v742_v6, %v694_v15  ;;  %v805_v50 = vmul.f32 %v2319_v43, %v2319_v43  ;;  %v715_v6 = vadd.f32 %v2271_v45, %v2269_v42  ;;  %v2616_v9 = vld [vmem:[#allocation3_spill] sm:$0xff]  ;;  %v812_v15 = vld [vmem:[%s2593_s5] sm:$0xf] }
 0x120   :  { %v710_v42 = vadd.f32 %v2255_v30, %v661_v26  ;;  %v800_v30 = vmul.f32 %v2275_v58, %v2275_v58  ;;  %v888_v26 = vld [vmem:[%s2597_s6 + $0x38] sm:$0xff] }
 0x121   :  { %v696_v44 = vadd.f32 %v695_v36, %v647_v14  ;;  %v2294_v13 = vadd.f32 %v791_v7, %v743_v41  ;;  %v803_v7 = vmul.f32 %v2281_v39, %v2281_v39  ;;  %v2350_v45 = vadd.f32 %v2273_v46, %v715_v6  ;;  %v886_v6 = vld [vmem:[%s2597_s6 + $0x28] sm:$0xff] }
 0x122   :  { %v2363_v46 = vadd.f32 %v2616_v9, %v710_v42  ;;  %v891_v42 = vld [vmem:[%s2597_s6 + $0x50] sm:$0xff] }
 0x123   :  { %v810_v22 = vmul.f32 %v2294_v13, %v2294_v13  ;;  %v799_v11 = vmul.f32 %v2350_v45, %v2350_v45  ;;  %v895_v9 = vld [vmem:[%s2597_s6 + $0x70] sm:$0xff] }
 0x124   :  { %v797_v14 = vmul.f32 %v2363_v46, %v2363_v46 }
 0x126   :  { %v744_v25 = vpop.f32.mrf.mxu2 }
 0x127   :  { %v745_v18 = vadd.f32 %v744_v25, %v696_v44  ;;  %v793_v59 = vpop.f32.mrf.mxu3  ;;  %v733_v25 = vadd.f32 %v732_v53, %v684_v34  ;;  %v181_v53 = vpop.permute.xlu1 %180 }
 0x129   :  { %v2296_v5 = vadd.f32 %v793_v59, %v745_v18  ;;  %v2313_v56 = vadd.f32 %v781_v54, %v733_v25  ;;  %v615_v54 = vadd.f32 %v2259_v32, %v181_v53  ;;  %v804_v32 = vmul.f32 %v2283_v49, %v2283_v49 }
 0x12b   :  { %813 = vmatpush.msrb.mxu0 %v2296_v5  ;;  %v811_v51 = vmul.f32 %v2296_v5, %v2296_v5  ;;  %v806_v61 = vmul.f32 %v2313_v56, %v2313_v56  ;;  %v664_v3 = vadd.f32 %v2261_v33, %v615_v54 }
 0x12d   :  { %814 = vmatpush.msrb.mxu0 %v2294_v13  ;;  %833 = vmatpush.msrb.mxu1 %v811_v51  ;;  %v713_v33 = vadd.f32 %v2265_v37, %v664_v3 }
 0x12f   :  { %815 = vmatpush.msrb.mxu0 %v2298_v19  ;;  %834 = vmatpush.msrb.mxu1 %v810_v22  ;;  %v2357_v37 = vadd.f32 %v2267_v38, %v713_v33  ;;  %v889_v33 = vld [vmem:[%s2597_s6 + $0x40] sm:$0xff] }
 0x131   :  { %816 = vmatpush.msrb.mxu0 %v2303_v60  ;;  %835 = vmatpush.msrb.mxu1 %v809_v31  ;;  %v798_v38 = vmul.f32 %v2357_v37, %v2357_v37 }
 0x133   :  { %817 = vmatpush.msrb.mxu0 %v2308_v52  ;;  %836 = vmatpush.msrb.mxu1 %v808_v48 }
 0x135   :  { %818 = vmatpush.msrb.mxu0 %v2313_v56  ;;  %837 = vmatpush.msrb.mxu1 %v807_v35 }
 0x137   :  { %819 = vmatpush.msrb.mxu0 %v2319_v43  ;;  %838 = vmatpush.msrb.mxu1 %v806_v61  ;;  %v1145_v61 = vld [vmem:[%s2596_s8] sm:$0xff] }
 0x139   :  { %820 = vmatpush.msrb.mxu0 %v2283_v49  ;;  %839 = vmatpush.msrb.mxu1 %v805_v50 }
 0x13b   :  { %821 = vmatpush.msrb.mxu0 %v2281_v39  ;;  %840 = vmatpush.msrb.mxu1 %v804_v32  ;;  %v883_v32 = vld [vmem:[%s2597_s6 + $0x10] sm:$0xff] }
 0x13d   :  { %822 = vmatpush.msrb.mxu0 %v2279_v10  ;;  %841 = vmatpush.msrb.mxu1 %v803_v7  ;;  %v884_v7 = vld [vmem:[%s2597_s6 + $0x18] sm:$0xff] }
 0x13f   :  { %823 = vmatpush.msrb.mxu0 %v2277_v2  ;;  %842 = vmatpush.msrb.mxu1 %v802_v8  ;;  %v890_v8 = vld [vmem:[%s2597_s6 + $0x48] sm:$0xff] }
 0x141   :  { %824 = vmatpush.msrb.mxu0 %v2275_v58  ;;  %843 = vmatpush.msrb.mxu1 %v801_v21  ;;  %v892_v21 = vld [vmem:[%s2597_s6 + $0x58] sm:$0xff] }
 0x143   :  { %825 = vmatpush.msrb.mxu0 %v2350_v45  ;;  %844 = vmatpush.msrb.mxu1 %v800_v30  ;;  %v894_v30 = vld [vmem:[%s2597_s6 + $0x68] sm:$0xff] }
 0x145   :  { %826 = vmatpush.msrb.mxu0 %v2357_v37  ;;  %845 = vmatpush.msrb.mxu1 %v799_v11  ;;  %v896_v11 = vld [vmem:[%s2597_s6 + $0x78] sm:$0xff] }
 0x147   :  { %827 = vmatpush.msrb.mxu0 %v2363_v46  ;;  %846 = vmatpush.msrb.mxu1 %v798_v38 }
 0x149   :  { %828 = vmatpush.msrb.mxu0 %v2369_v24  ;;  %847 = vmatpush.msrb.mxu1 %v797_v14 }
 0x14a   :  { %829 = vmatmul.f32.vlgmr.msrb.gmra.mxu0 %v812_v15 }
 0x14b   :  { %848 = vmatpush.msrb.mxu1 %v796_v16 }
 0x14c   :  { %849 = vmatmul.f32.vlgmr.msrb.gmra.mxu1 %v812_v15 }
 0x1c7   :  { %v830_v17 = vpop.f32.mrf.mxu0 }
 0x1c8   :  { %v854_v36 = vsel %vm853_vm0, %v830_v17, 0.0 }
 0x1c9   :  { %855 = vadd.xlane.f32.xlu1 %v854_v36  ;;  %v850_v29 = vpop.f32.mrf.mxu1 }
 0x1ca   :  { %v858_v40 = vsel %vm853_vm0, %v850_v29, 0.0 }
 0x1cb   :  { %859 = vadd.xlane.f32.xlu2 %v858_v40 }
 0x23c   :  { %v856_v41 = vpop.xlane.xlu1 %855 }
 0x23d   :  { %v857_v44 = vmul.f32 0.00028935185, %v856_v41 }
 0x23e   :  { %v860_v18 = vpop.xlane.xlu2 %859 }
 0x23f   :  { %v862_v4 = vmul.f32 %v857_v44, %v857_v44  ;;  %v861_v34 = vmul.f32 0.00028935185, %v860_v18 }
 0x241   :  { %v863_v59 = vsub.f32 %v861_v34, %v862_v4 }
 0x243   :  { %v864_v23 = vmax.f32 %v863_v59, 0.0 }
 0x245   :  { %v866_v63 = vadd.f32 1e-05, %v864_v23 }
 0x247   :  { %1798 = vrsqrt.f32 %v866_v63  ;;  %vm873_vm2 = vweird.f32 %v866_v63 }
 0x24d   :  { %v1799_v28 = vpop.eup %1798 }
 0x24e   :  { %v868_v51 = vmul.f32 %v1799_v28, %v866_v63  ;;  %vm874_vm1 = vweird.f32 %v1799_v28 }
 0x24f   :  { %vm875_vm3 = vmor %vm873_vm2, %vm874_vm1 }
 0x250   :  { %v869_v55 = vmul.f32 %v1799_v28, %v868_v51 }
 0x252   :  { %v870_v25 = vmul.f32 0.5, %v869_v55 }
 0x254   :  { %v871_v22 = vsub.f32 1.5, %v870_v25 }
 0x256   :  { %v872_v31 = vmul.f32 %v1799_v28, %v871_v22 }
 0x258   :  { %v876_v48 = vsel %vm875_vm3, %v1799_v28, %v872_v31 }
 0x259   :  { %v877_v53 = vmul.f32 %v876_v48, %v865_v47 }
 0x25b   :  { %899 = vperm.xlu0 %1795, %v877_v53   ;;  %v879_v35 = vmul.f32 %v877_v53, %v857_v44 }
 0x25d   :  { %v880_v54 = vsub.f32 %v878_v57, %v879_v35 }
 0x263   :  { %903 = vperm.xlu0 %1795, %v880_v54  }
 0x26b   :  { %1148 = vperm.xlu0 %1795, %v1145_v61  }
 0x2cd   :  { %v900_v50 = vpop.permute.xlu0 %899 }
 0x2ce   :  { %1683 = vmatpush.msk.msra.mxu0 %vm853_vm0, %v900_v50  ;;  %1791 = vmatpush.msk.msra.mxu1 %vm853_vm0, %v900_v50 }
 0x2cf   :  { %1792 = vmatpush.msk.msrb.mxu2 %vm853_vm0, %v900_v50  ;;  %1684 = vmatmul.msk.f32.vlgmr.msra.gmra.mxu0 %vm905_vm4, %v881_v62 }
 0x2d0   :  { %1685 = vmatmul.msk.f32.vlgmr.msra.gmra.mxu1 %vm905_vm4, %v882_v0  ;;  %1688 = vmatmul.msk.f32.vlgmr.msrb.gmra.mxu2 %vm905_vm4, %v885_v1 }
 0x2d5   :  { %v904_v3 = vpop.permute.xlu0 %903 }
 0x2d6   :  { %1700 = vmatpush.msk.msrb.mxu0 %vm853_vm0, %v904_v3  ;;  %1793 = vmatpush.msk.msrb.mxu3 %vm853_vm0, %v904_v3 }
 0x2d7   :  { %1701 = vmatmul.msk.f32.vlgmr.msrb.gmra.mxu0 %vm905_vm4, %v881_v62  ;;  %1705 = vmatmul.msk.f32.vlgmr.msrb.gmra.mxu3 %vm905_vm4, %v885_v1 }
 0x2d8   :  { %1686 = vmatmul.msk.f32.gmra.mxu1 %vm905_vm4, %v883_v32  ;;  %1689 = vmatmul.msk.f32.gmra.mxu2 %vm905_vm4, %v886_v6 }
 0x2df   :  { %1702 = vmatmul.msk.f32.gmra.mxu0 %vm905_vm4, %v882_v0  ;;  %1706 = vmatmul.msk.f32.gmra.mxu3 %vm905_vm4, %v886_v6 }
 0x2e0   :  { %1687 = vmatmul.msk.f32.gmra.mxu1 %vm905_vm4, %v884_v7  ;;  %1690 = vmatmul.msk.f32.gmra.mxu2 %vm905_vm4, %v887_v20 }
 0x2e7   :  { %1703 = vmatmul.msk.f32.gmra.mxu0 %vm905_vm4, %v883_v32  ;;  %1707 = vmatmul.msk.f32.gmra.mxu3 %vm905_vm4, %v887_v20 }
 0x2e8   :  { %1691 = vmatmul.msk.f32.gmra.mxu2 %vm905_vm4, %v888_v26 }
 0x2ef   :  { %1704 = vmatmul.msk.f32.gmra.mxu0 %vm905_vm4, %v884_v7  ;;  %1708 = vmatmul.msk.f32.gmra.mxu3 %vm905_vm4, %v888_v26 }
 0x2f0   :  { %1692 = vmatmul.msk.f32.gmra.mxu2 %vm905_vm4, %v889_v33 }
 0x2f7   :  { %1709 = vmatmul.msk.f32.gmra.mxu3 %vm905_vm4, %v889_v33 }
 0x2f8   :  { %1693 = vmatmul.msk.f32.gmra.mxu2 %vm905_vm4, %v890_v8 }
 0x2ff   :  { %1710 = vmatmul.msk.f32.gmra.mxu3 %vm905_vm4, %v890_v8 }
 0x300   :  { %1694 = vmatmul.msk.f32.gmra.mxu2 %vm905_vm4, %v891_v42 }
 0x307   :  { %1711 = vmatmul.msk.f32.gmra.mxu3 %vm905_vm4, %v891_v42 }
 0x308   :  { %1695 = vmatmul.msk.f32.gmra.mxu2 %vm905_vm4, %v892_v21 }
 0x30f   :  { %1712 = vmatmul.msk.f32.gmra.mxu3 %vm905_vm4, %v892_v21 }
 0x310   :  { %1696 = vmatmul.msk.f32.gmra.mxu2 %vm905_vm4, %v893_v27 }
 0x317   :  { %1713 = vmatmul.msk.f32.gmra.mxu3 %vm905_vm4, %v893_v27 }
 0x318   :  { %1697 = vmatmul.msk.f32.gmra.mxu2 %vm905_vm4, %v894_v30 }
 0x31f   :  { %1714 = vmatmul.msk.f32.gmra.mxu3 %vm905_vm4, %v894_v30 }
 0x320   :  { %1698 = vmatmul.msk.f32.gmra.mxu2 %vm905_vm4, %v895_v9 }
 0x327   :  { %1715 = vmatmul.msk.f32.gmra.mxu3 %vm905_vm4, %v895_v9 }
 0x328   :  { %1699 = vmatmul.msk.f32.gmra.mxu2 %vm905_vm4, %v896_v11 }
 0x32f   :  { %1716 = vmatmul.msk.f32.gmra.mxu3 %vm905_vm4, %v896_v11 }
 0x34d   :  { %v978_v6 = vpop.f32.mrf.mxu1 }
 0x353   :  { %v987_v12 = vpop.f32.mrf.mxu2 }
 0x354   :  { %v1092_v38 = vmul.f32 %v987_v12, %v2275_v58 }
 0x35a   :  { %v1052_v14 = vpop.f32.mrf.mxu3 }
 0x35b   :  { %v990_v15 = vpop.f32.mrf.mxu2  ;;  %v1108_v16 = vadd.f32 %v1092_v38, %v1052_v14 }
 0x35c   :  { %v1093_v17 = vmul.f32 %v990_v15, %v2277_v2 }
 0x35d   :  { %v1124_v41 = vmax.f32 %v1108_v16, 0.0 }
 0x362   :  { %v1055_v36 = vpop.f32.mrf.mxu3 }
 0x363   :  { %v993_v29 = vpop.f32.mrf.mxu2  ;;  %v1109_v40 = vadd.f32 %v1093_v17, %v1055_v36  ;;  %v981_v17 = vpop.f32.mrf.mxu1 }
 0x364   :  { %v1094_v4 = vmul.f32 %v993_v29, %v2279_v10 }
 0x365   :  { %v1125_v44 = vmax.f32 %v1109_v40, 0.0 }
 0x367   :  { %v2481_v18 = vpack.c.bf16 %v1125_v44, %v1124_v41 }
 0x36a   :  { %v1058_v34 = vpop.f32.mrf.mxu3 }
 0x36b   :  { %v996_v59 = vpop.f32.mrf.mxu2  ;;  %v1110_v23 = vadd.f32 %v1094_v4, %v1058_v34 }
 0x36c   :  { %v1095_v63 = vmul.f32 %v996_v59, %v2281_v39  ;;  %v975_v39 = vpop.f32.mrf.mxu0 }
 0x36d   :  { %v1126_v55 = vmax.f32 %v1110_v23, 0.0 }
 0x372   :  { %v1061_v58 = vpop.f32.mrf.mxu3 }
 0x373   :  { %v999_v28 = vpop.f32.mrf.mxu2  ;;  %v1111_v51 = vadd.f32 %v1095_v63, %v1061_v58 }
 0x374   :  { %v1096_v22 = vmul.f32 %v999_v28, %v2283_v49  ;;  %v1040_v3 = vpop.f32.mrf.mxu0  ;;  %v1089_v28 = vmul.f32 %v978_v6, %v2363_v46  ;;  %v1149_v46 = vpop.permute.xlu0 %1148 }
 0x375   :  { %v1127_v25 = vmax.f32 %v1111_v51, 0.0 }
 0x377   :  { %v1139_v2 = vpack.c.bf16 %v1127_v25, %v1126_v55  ;;  %v1088_v55 = vmul.f32 %v975_v39, %v2369_v24 }
 0x37a   :  { %v1064_v47 = vpop.f32.mrf.mxu3 }
 0x37b   :  { %v1002_v31 = vpop.f32.mrf.mxu2  ;;  %v1112_v48 = vadd.f32 %v1096_v22, %v1064_v47  ;;  %v1104_v47 = vadd.f32 %v1088_v55, %v1040_v3  ;;  %v1328_v55 = vld [vmem:[%s2604_s15 + $0x8] sm:$0xff] }
 0x37c   :  { %v1043_v20 = vpop.f32.mrf.mxu0 }
 0x37d   :  { %v1128_v34 = vmax.f32 %v1112_v48, 0.0  ;;  %v1105_v25 = vadd.f32 %v1089_v28, %v1043_v20 }
 0x37f   :  { %v1121_v48 = vmax.f32 %v1105_v25, 0.0  ;;  %v1327_v25 = vld [vmem:[%s2604_s15] sm:$0xff] }
 0x382   :  { %v1067_v53 = vpop.f32.mrf.mxu3 }
 0x383   :  { %v1005_v35 = vpop.f32.mrf.mxu2 }
 0x384   :  { %v1098_v14 = vmul.f32 %v1005_v35, %v2313_v56  ;;  %v1046_v29 = vpop.f32.mrf.mxu0  ;;  %v984_v56 = vpop.f32.mrf.mxu1  ;;  %v1120_v35 = vmax.f32 %v1104_v47, 0.0 }
 0x385   :  { %v1091_v63 = vmul.f32 %v984_v56, %v2350_v45  ;;  %v1331_v56 = vld [vmem:[%s2604_s15 + $0x20] sm:$0xff] }
 0x386   :  { %v1136_v45 = vpack.c.bf16 %v1121_v48, %v1120_v35 }
 0x38a   :  { %v1070_v57 = vpop.f32.mrf.mxu3 }
 0x38b   :  { %v1008_v10 = vpop.f32.mrf.mxu2 }
 0x38c   :  { %v1099_v9 = vmul.f32 %v1008_v10, %v2308_v52  ;;  %v1049_v23 = vpop.f32.mrf.mxu0 }
 0x38d   :  { %v1107_v58 = vadd.f32 %v1091_v63, %v1049_v23  ;;  %v1329_v23 = vld [vmem:[%s2604_s15 + $0x10] sm:$0xff] }
 0x38f   :  { %v1123_v22 = vmax.f32 %v1107_v58, 0.0 }
 0x392   :  { %v1073_v54 = vpop.f32.mrf.mxu3 }
 0x393   :  { %v1011_v61 = vpop.f32.mrf.mxu2  ;;  %v1115_v15 = vadd.f32 %v1099_v9, %v1073_v54 }
 0x394   :  { %v1100_v21 = vmul.f32 %v1011_v61, %v2303_v60 }
 0x395   :  { %v1131_v40 = vmax.f32 %v1115_v15, 0.0  ;;  %v1237_v15 = vld [vmem:[%s2603_s12] sm:$0xff] }
 0x39a   :  { %v1076_v62 = vpop.f32.mrf.mxu3 }
 0x39b   :  { %v1014_v50 = vpop.f32.mrf.mxu2  ;;  %v1116_v11 = vadd.f32 %v1100_v21, %v1076_v62  ;;  %v1221_v21 = vld [vmem:[%s2600_s9] sm:$0xf] }
 0x39c   :  { %v1101_v26 = vmul.f32 %v1014_v50, %v2298_v19  ;;  %v1097_v19 = vmul.f32 %v1002_v31, %v2319_v43  ;;  %v1090_v43 = vmul.f32 %v981_v17, %v2357_v37  ;;  %v1144_v37 = vld [vmem:[%s2598_s7] sm:$0xf]  ;;  %v1342_v17 = vld [vmem:[%s2604_s15 + $0x78] sm:$0xff] }
 0x39d   :  { %v1132_v36 = vmax.f32 %v1116_v11, 0.0  ;;  %v1234_v11 = vld [vmem:[%s2601_s10] sm:$0xf] }
 0x39e   :  { %v1113_v60 = vadd.f32 %v1097_v19, %v1067_v53  ;;  %v1106_v51 = vadd.f32 %v1090_v43, %v1046_v29  ;;  %v1341_v19 = vld [vmem:[%s2604_s15 + $0x70] sm:$0xff]  ;;  %v1338_v29 = vld [vmem:[%s2604_s15 + $0x58] sm:$0xff] }
 0x3a0   :  { %v1129_v52 = vmax.f32 %v1113_v60, 0.0  ;;  %v1122_v31 = vmax.f32 %v1106_v51, 0.0  ;;  %v1337_v60 = vld [vmem:[%s2604_s15 + $0x50] sm:$0xff]  ;;  %v1296_v51 = vld [vmem:[%s2605_s13] sm:$0xff] }
 0x3a2   :  { %v1079_v0 = vpop.f32.mrf.mxu3  ;;  %v1140_v59 = vpack.c.bf16 %v1129_v52, %v1128_v34  ;;  %v1137_v53 = vpack.c.bf16 %v1123_v22, %v1122_v31  ;;  %v1333_v52 = vld [vmem:[%s2604_s15 + $0x30] sm:$0xff]  ;;  %v1332_v34 = vld [vmem:[%s2604_s15 + $0x28] sm:$0xff] }
 0x3a3   :  { %v1017_v1 = vpop.f32.mrf.mxu2  ;;  %v1117_v27 = vadd.f32 %v1101_v26, %v1079_v0 }
 0x3a4   :  { %v1102_v49 = vmul.f32 %v1017_v1, %v2294_v13 }
 0x3a5   :  { %v1133_v13 = vmax.f32 %v1117_v27, 0.0 }
 0x3a7   :  { %v1142_v41 = vpack.c.bf16 %v1133_v13, %v1132_v36  ;;  %v1339_v36 = vld [vmem:[%s2604_s15 + $0x60] sm:$0xff] }
 0x3aa   :  { %v1082_v32 = vpop.f32.mrf.mxu3 }
 0x3ab   :  { %v1020_v7 = vpop.f32.mrf.mxu2  ;;  %v1118_v8 = vadd.f32 %v1102_v49, %v1082_v32 }
 0x3ac   :  { %v1103_v33 = vmul.f32 %v1020_v7, %v2296_v5  ;;  %v1114_v5 = vadd.f32 %v1098_v14, %v1070_v57  ;;  %v1165_v57 = vld [vmem:[%s2599_s11] sm:$0xf] }
 0x3ad   :  { %v1134_v12 = vmax.f32 %v1118_v8, 0.0  ;;  %v1297_v14 = vld [vmem:[%s2602_s14] sm:$0xff] }
 0x3ae   :  { %v1130_v44 = vmax.f32 %v1114_v5, 0.0  ;;  %v1340_v5 = vld [vmem:[%s2604_s15 + $0x68] sm:$0xff] }
 0x3b0   :  { %v1141_v4 = vpack.c.bf16 %v1131_v40, %v1130_v44  ;;  %v1336_v40 = vld [vmem:[%s2604_s15 + $0x48] sm:$0xff]  ;;  %v1334_v44 = vld [vmem:[%s2604_s15 + $0x38] sm:$0xff] }
 0x3b2   :  { %v1085_v42 = vpop.f32.mrf.mxu3 }
 0x3b3   :  { %v1119_v30 = vadd.f32 %v1103_v33, %v1085_v42 }
 0x3b5   :  { %v1135_v38 = vmax.f32 %v1119_v30, 0.0 }
 0x3b7   :  { %v1143_v16 = vpack.c.bf16 %v1135_v38, %v1134_v12 }
 0x3b9   :  { %1151 = vmatpush.bf16.msra.mxu0 %v1143_v16 }
 0x3bd   :  { %1152 = vmatpush.bf16.msra.mxu0 %v1142_v41  ;;  %v1335_v41 = vld [vmem:[%s2604_s15 + $0x40] sm:$0xff] }
 0x3c1   :  { %1153 = vmatpush.bf16.msra.mxu0 %v1141_v4 }
 0x3c5   :  { %1154 = vmatpush.bf16.msra.mxu0 %v1140_v59  ;;  %v1330_v59 = vld [vmem:[%s2604_s15 + $0x18] sm:$0xff] }
 0x3c9   :  { %1155 = vmatpush.bf16.msra.mxu0 %v1139_v2 }
 0x3cd   :  { %1156 = vmatpush.bf16.msra.mxu0 %v2481_v18 }
 0x3d1   :  { %1157 = vmatpush.bf16.msra.mxu0 %v1137_v53  ;;  %v1382_v53 = vld [vmem:[%s2606_s16] sm:$0x3] }
 0x3d5   :  { %1158 = vmatpush.bf16.msra.mxu0 %v1136_v45 }
 0x3d8   :  { %1159 = vmatmul.bf16.vlgmr.msra.gmra.mxu0 %v1144_v37 }
 0x3d9   :  { %1343 = vmatpush.msrb.mxu0 %v1342_v17 }
 0x3db   :  { %1344 = vmatpush.msrb.mxu0 %v1341_v19 }
 0x3dd   :  { %1345 = vmatpush.msrb.mxu0 %v1340_v5 }
 0x3df   :  { %1346 = vmatpush.msrb.mxu0 %v1339_v36 }
 0x3e1   :  { %1347 = vmatpush.msrb.mxu0 %v1338_v29 }
 0x3e3   :  { %1348 = vmatpush.msrb.mxu0 %v1337_v60 }
 0x3e5   :  { %1349 = vmatpush.msrb.mxu0 %v1336_v40 }
 0x3e7   :  { %1350 = vmatpush.msrb.mxu0 %v1335_v41 }
 0x3e9   :  { %1351 = vmatpush.msrb.mxu0 %v1334_v44 }
 0x3eb   :  { %1352 = vmatpush.msrb.mxu0 %v1333_v52 }
 0x3ed   :  { %1353 = vmatpush.msrb.mxu0 %v1332_v34 }
 0x3ef   :  { %1354 = vmatpush.msrb.mxu0 %v1331_v56 }
 0x3f1   :  { %1355 = vmatpush.msrb.mxu0 %v1330_v59 }
 0x3f3   :  { %1356 = vmatpush.msrb.mxu0 %v1329_v23 }
 0x3f5   :  { %1357 = vmatpush.msrb.mxu0 %v1328_v55 }
 0x3f7   :  { %1358 = vmatpush.msrb.mxu0 %v1327_v25 }
 0x455   :  { %v1160_v2 = vpop.f32.mrf.mxu0 }
 0x456   :  { %v2501_v24 = vadd.f32 %v1160_v2, %v1149_v46 }
 0x458   :  { %v1164_v18 = vmul.f32 %v2501_v24, %v2501_v24  ;;  %1185 = vmatpush.msrb.mxu1 %v2501_v24 }
 0x459   :  { %1717 = vmatmul.msk.f32.vlgmr.msrb.gmra.mxu1 %vm1166_vm5, %v1165_v57 }
 0x45a   :  { %1205 = vmatpush.msra.mxu1 %v1164_v18 }
 0x45d   :  { %v1162_v10 = vpop.f32.mrf.mxu0 }
 0x461   :  { %1718 = vmatmul.msk.f32.vlgmr.msra.gmra.mxu1 %vm1166_vm5, %v1165_v57 }
 0x4d6   :  { %v1187_v54 = vpop.f32.mrf.mxu1 }
 0x4d7   :  { %v1210_v61 = vsel %vm853_vm0, %v1187_v54, 0.0 }
 0x4d8   :  { %1211 = vadd.xlane.f32.xlu0 %v1210_v61 }
 0x4de   :  { %v1207_v62 = vpop.f32.mrf.mxu1 }
 0x4df   :  { %v1214_v50 = vsel %vm853_vm0, %v1207_v62, 0.0 }
 0x4e0   :  { %1215 = vadd.xlane.f32.xlu2 %v1214_v50 }
 0x54b   :  { %v1212_v39 = vpop.xlane.xlu0 %1211 }
 0x54c   :  { %v1213_v0 = vmul.f32 0.0078125, %v1212_v39 }
 0x54e   :  { %v1218_v3 = vmul.f32 %v1213_v0, %v1213_v0 }
 0x553   :  { %v1216_v1 = vpop.xlane.xlu2 %1215 }
 0x554   :  { %v1217_v32 = vmul.f32 0.0078125, %v1216_v1 }
 0x556   :  { %v1219_v6 = vsub.f32 %v1217_v32, %v1218_v3 }
 0x558   :  { %v1220_v7 = vmax.f32 %v1219_v6, 0.0 }
 0x55a   :  { %v1222_v49 = vadd.f32 1e-05, %v1220_v7 }
 0x55c   :  { %1800 = vrsqrt.f32 %v1222_v49  ;;  %vm1229_vm7 = vweird.f32 %v1222_v49 }
 0x562   :  { %v1801_v20 = vpop.eup %1800 }
 0x563   :  { %v1224_v26 = vmul.f32 %v1801_v20, %v1222_v49  ;;  %vm1230_vm6 = vweird.f32 %v1801_v20 }
 0x564   :  { %vm1231_vm8 = vmor %vm1229_vm7, %vm1230_vm6 }
 0x565   :  { %v1225_v33 = vmul.f32 %v1801_v20, %v1224_v26 }
 0x567   :  { %v1226_v8 = vmul.f32 0.5, %v1225_v33 }
 0x569   :  { %v1227_v42 = vsub.f32 1.5, %v1226_v8 }
 0x56b   :  { %v1228_v27 = vmul.f32 %v1801_v20, %v1227_v42 }
 0x56d   :  { %v1232_v30 = vsel %vm1231_vm8, %v1801_v20, %v1228_v27 }
 0x56e   :  { %v1233_v9 = vmul.f32 %v1232_v30, %v1221_v21 }
 0x570   :  { %1240 = vperm.xlu1 %1796, %v1233_v9   ;;  %v1235_v12 = vmul.f32 %v1233_v9, %v1213_v0 }
 0x572   :  { %v1236_v38 = vsub.f32 %v1234_v11, %v1235_v12 }
 0x574   :  { %1244 = vperm.xlu2 %1797, %v1236_v38  }
 0x578   :  { %1300 = vperm.xlu1 %1796, %v1297_v14  }
 0x5ce   :  { %v1245_v16 = vpop.permute.xlu2 %1244 }
 0x5e2   :  { %v1241_v13 = vpop.permute.xlu1 %1240 }
 0x5e3   :  { %1719 = vmatpush.msk.msrb.mxu1 %vm853_vm0, %v1241_v13 }
 0x5e4   :  { %1720 = vmatmul.msk.f32.vlgmr.msrb.gmra.mxu1 %vm905_vm4, %v1237_v15 }
 0x5e5   :  { %1721 = vmatpush.msk.msra.mxu1 %vm853_vm0, %v1245_v16 }
 0x5ea   :  { %v1301_v22 = vpop.permute.xlu1 %1300 }
 0x5ec   :  { %1722 = vmatmul.msk.f32.vlgmr.msra.gmra.mxu1 %vm905_vm4, %v1237_v15 }
 0x661   :  { %v1270_v4 = vpop.f32.mrf.mxu1 }
 0x662   :  { %v1293_v63 = vmul.f32 %v1270_v4, %v2501_v24 }
 0x669   :  { %v1290_v43 = vpop.f32.mrf.mxu1 }
 0x66a   :  { %v1294_v58 = vadd.f32 %v1293_v63, %v1290_v43 }
 0x66c   :  { %v1295_v28 = vmax.f32 %v1294_v58, 0.0 }
 0x66e   :  { %1321 = vmatpush.msrb.mxu1 %v1295_v28 }
 0x66f   :  { %1723 = vmatmul.msk.f32.vlgmr.msrb.gmra.mxu1 %vm1166_vm5, %v1296_v51 }
 0x670   :  { %1724 = vmatpush.msk.msra.mxu1 %vm1390_vm9, %v1382_v53 }
 0x6ec   :  { %v1323_v47 = vpop.f32.mrf.mxu1 }
 0x6ed   :  { %v1324_v31 = vadd.f32 %v1323_v47, %v1301_v22 }
 0x6ef   :  { %1359 = vmatmul.f32.vlgmr.msrb.gmra.mxu0 %v1324_v31  ;;  %v1326_v48 = vmul.f32 %v1324_v31, %v1324_v31 }
 0x6f7   :  { %1362 = vmatmul.f32.gmra.mxu0 %v1326_v48 }
 0x76c   :  { %v1360_v35 = vpop.f32.mrf.mxu0 }
 0x76d   :  { %v1366_v45 = vmul.f32 0.015625, %v1360_v35 }
 0x76f   :  { %1725 = vmatmul.msk.f32.vlgmr.msra.gmra.mxu1 %vm1383_vm10, %v1366_v45  ;;  %v1368_v46 = vmul.f32 %v1366_v45, %v1366_v45 }
 0x774   :  { %v1363_v37 = vpop.f32.mrf.mxu0 }
 0x775   :  { %v1367_v2 = vmul.f32 0.015625, %v1363_v37 }
 0x777   :  { %v1369_v24 = vsub.f32 %v1367_v2, %v1368_v46 }
 0x779   :  { %v1370_v57 = vmax.f32 %v1369_v24, 0.0 }
 0x77b   :  { %v1371_v18 = vadd.f32 1e-05, %v1370_v57 }
 0x77d   :  { %1802 = vrsqrt.f32 %v1371_v18  ;;  %vm1378_vm12 = vweird.f32 %v1371_v18 }
 0x783   :  { %v1803_v10 = vpop.eup %1802 }
 0x784   :  { %v1373_v54 = vmul.f32 %v1803_v10, %v1371_v18  ;;  %vm1379_vm11 = vweird.f32 %v1803_v10 }
 0x785   :  { %vm1380_vm13 = vmor %vm1378_vm12, %vm1379_vm11 }
 0x786   :  { %v1374_v61 = vmul.f32 %v1803_v10, %v1373_v54 }
 0x788   :  { %v1375_v62 = vmul.f32 0.5, %v1374_v61 }
 0x78a   :  { %v1376_v50 = vsub.f32 1.5, %v1375_v62 }
 0x78c   :  { %v1377_v39 = vmul.f32 %v1803_v10, %v1376_v50 }
 0x78e   :  { %v1381_v0 = vsel %vm1380_vm13, %v1803_v10, %v1377_v39 }
 0x78f   :  { %1726 = vmatmul.msk.f32.gmra.mxu1 %vm1383_vm10, %v1381_v0 }
 0x7ec   :  { %v1411_v1 = vpop.f32.mrf.mxu1 }
 0x7ed   :  { %v1417_v3 = vsub.f32 %v1324_v31, %v1411_v1 }
 0x80c   :  { %v1414_v32 = vpop.f32.mrf.mxu1 }
 0x80d   :  { %v1418_v6 = vmul.f32 %v1417_v3, %v1414_v32 }
 0x80f   :  { %vm1419_vm14 = vcmp.ge.f32.partialorder %v1418_v6, 0.0  ;;  %v1420_v7 = vmul.f32 0.1, %v1418_v6 }
 0x811   :  { %v1421_v49 = vsel %vm1419_vm14, %v1418_v6, %v1420_v7 }
 0x812   :  { %1422 = vst [vmem:[%s2607_s17] sm:$0xff] %v1421_v49 }

</bundles_post_ra>
